<compile_context>
chip_gen: v7x
topology: tpu7x:2x2x1
jax: 0.10.0
libtpu: 0.0.40
codegen_flags: <defaults>
</compile_context>

<pallas_src>
import functools
import math

import jax
import jax.numpy as jnp
from jax import lax
from jax.experimental import pallas as pl
from jax.experimental.pallas import tpu as pltpu

EPS = 1e-5
LANE = 128

# Per-copy budget for keeping the neighbor-feature matrix VMEM-resident.  The
# pipeline may double-buffer the (constant-index) block, so actual reservation is
# up to 2x this.  2*16 MiB + ~16 MiB working set stays under v7x's 64 MiB VMEM.
# TODO(synk): pipeline_mode=pl.Buffered(1) on the resident spec would extend the
#             resident range to ~2x larger graphs.
_RESIDENT_SRC_BUDGET = 16 * 1024 * 1024


def _round_up(v, m):
    return (v + m - 1) // m * m


def _pad2d(a, rows, cols):
    out = jnp.zeros((rows, cols), a.dtype)
    return out.at[: a.shape[0], : a.shape[1]].set(a)


def _sage_layer_kernel(*refs, h_true, tk, src_resident, add_residual):
    """One SAGE layer: mean-aggregate (K-tiled adj @ src on the MXU with an f32 VMEM
    accumulator), fused lin_l/lin_r, masked node-mode LayerNorm, ReLU, optional
    residual.  Grid = (row tiles 'parallel', neighbor tiles 'arbitrary')."""
    if add_residual:
        (adj_ref, src_ref, self_ref, invdeg_ref, res_ref,
         wl_ref, wr_ref, b_ref, g_ref, be_ref, out_ref, acc_ref) = refs
    else:
        (adj_ref, src_ref, self_ref, invdeg_ref,
         wl_ref, wr_ref, b_ref, g_ref, be_ref, out_ref, acc_ref) = refs
        res_ref = None

    k = pl.program_id(1)

    @pl.when(k == 0)
    def _():
        acc_ref[...] = jnp.zeros_like(acc_ref)

    # Neighbor-feature tile for this K step: either a slice of the VMEM-resident
    # matrix (DMA'd once) or the streamed (tk, dp) block.
    if src_resident:
        start = pl.multiple_of(k * tk, tk)
        src_tile = src_ref[pl.ds(start, tk), :]
    else:
        src_tile = src_ref[...]

    # Aggregation numerator: sum_j adj[i, j] * src[j, :], accumulated over K tiles.
    # adj is a 0/1 mask stored as int8; widen to bf16 right before the dot so the
    # MXU runs a native bf16 matmul with f32 accumulation.
    acc_ref[...] += jnp.dot(
        adj_ref[...].astype(jnp.bfloat16),
        src_tile,
        preferred_element_type=jnp.float32,
    )

    @pl.when(k == pl.num_programs(1) - 1)
    def _():
        # Mean aggregation: exact inv_deg column (0 for isolated nodes).
        agg = (acc_ref[...] * invdeg_ref[...]).astype(jnp.bfloat16)   # [TM, Dp]

        # SAGEConv: lin_l(mean_nbr) + bias + lin_r(self), two bf16 MXU dots.
        h = (jnp.dot(agg, wl_ref[...], preferred_element_type=jnp.float32)
             + jnp.dot(self_ref[...], wr_ref[...], preferred_element_type=jnp.float32)
             + b_ref[...])

        # Node-mode LayerNorm over the true feature width (two-pass, masked so the
        # zero-padded lanes do not perturb the statistics).
        # TODO(synk): PyG norm.LayerNorm defaults to mode='graph'; this is mode='node'.
        lane = lax.broadcasted_iota(jnp.int32, h.shape, 1)
        valid = lane < h_true
        inv_w = 1.0 / float(h_true)
        mu = jnp.sum(jnp.where(valid, h, 0.0), axis=-1, keepdims=True) * inv_w
        d = jnp.where(valid, h - mu, 0.0)
        var = jnp.sum(d * d, axis=-1, keepdims=True) * inv_w
        y = d * lax.rsqrt(var + EPS) * g_ref[...] + be_ref[...]
        y = jnp.maximum(y, 0.0)                       # padded lanes stay exactly 0

        if add_residual:
            y = y + res_ref[...]

        out_ref[...] = y.astype(out_ref.dtype)


def _sage_layer(adj_i8, src, xself, invdeg, res, wl, wr, b, g, be, *,
                h_true, out_dtype, tm, tk, src_resident, vmem_limit):
    np_rows, np_cols = adj_i8.shape
    dp = src.shape[1]
    hp = wl.shape[1]
    add_residual = res is not None
    if add_residual:
        assert res.shape[1] == hp

    kernel = functools.partial(
        _sage_layer_kernel, h_true=int(h_true), tk=tk,
        src_resident=src_resident, add_residual=add_residual)

    if src_resident:
        # Whole feature matrix as one block with a constant index_map: it is DMA'd
        # into VMEM exactly once and sliced in-kernel per K step.
        src_spec = pl.BlockSpec((np_cols, dp), lambda i, k: (0, 0))
    else:
        src_spec = pl.BlockSpec((tk, dp), lambda i, k: (k, 0))

    in_specs = [
        pl.BlockSpec((tm, tk), lambda i, k: (i, k)),        # adj tile (rows, nbrs), int8
        src_spec,                                           # neighbor features, bf16
        pl.BlockSpec((tm, dp), lambda i, k: (i, 0)),        # self features, bf16
        pl.BlockSpec((tm, 1), lambda i, k: (i, 0)),         # inv_deg column, f32
    ]
    args = [adj_i8, src, xself, invdeg]
    if add_residual:
        in_specs.append(pl.BlockSpec((tm, hp), lambda i, k: (i, 0)))   # residual, f32
        args.append(res)
    in_specs += [
        pl.BlockSpec((dp, hp), lambda i, k: (0, 0)),        # Wl (bf16)
        pl.BlockSpec((dp, hp), lambda i, k: (0, 0)),        # Wr (bf16)
        pl.BlockSpec((1, hp), lambda i, k: (0, 0)),         # bias
        pl.BlockSpec((1, hp), lambda i, k: (0, 0)),         # gamma (zero-padded)
        pl.BlockSpec((1, hp), lambda i, k: (0, 0)),         # beta  (zero-padded)
    ]
    args += [wl, wr, b, g, be]

    return pl.pallas_call(
        kernel,
        out_shape=jax.ShapeDtypeStruct((np_rows, hp), out_dtype),
        grid_spec=pltpu.PrefetchScalarGridSpec(
            num_scalar_prefetch=0,
            grid=(np_rows // tm, np_cols // tk),            # reduction axis last
            in_specs=in_specs,
            out_specs=pl.BlockSpec((tm, hp), lambda i, k: (i, 0)),
            scratch_shapes=[pltpu.VMEM((tm, dp), jnp.float32)],
        ),
        compiler_params=pltpu.CompilerParams(
            dimension_semantics=("parallel", "arbitrary"),
            vmem_limit_bytes=vmem_limit,
        ),
    )(*args)


def gcn_sage_residual(x, adj, params, *, tm=256, tk=512):
    """x: [N, Din] f32, adj: [N, N] 0/1 mask. Returns [N, Dout] f32 (Dout == Din)."""
    n, din = x.shape
    hid = params["w1l"].shape[1]
    dout = params["w2l"].shape[1]
    assert dout == din, "residual add requires output_dim == input_dim"

    # --- tile selection / node padding -------------------------------------
    base = _round_up(n, LANE)
    while tk > base:
        tk //= 2
    while tm > base:
        tm //= 2
    # Keep >= 2 row tiles when possible so the 'parallel' axis splits across v7x's
    # two TensorCores.
    if base // tm < 2 and tm > LANE:
        tm //= 2
    # h1 rows feed layer-2's neighbor axis, so row and column padding must match.
    np_ = _round_up(n, math.lcm(tm, tk))

    dp = _round_up(din, LANE)            # layer-1 input width
    hp1 = _round_up(hid, LANE)           # layer-1 output width
    hp2 = _round_up(dout, LANE)          # layer-2 output width (== dp, residual-compat)

    # --- exact inverse degree (computed once, shared by both layers) --------
    deg = jnp.sum(adj.astype(jnp.float32), axis=1, keepdims=True)        # [n, 1]
    inv_deg = jnp.where(deg > 0.0, 1.0 / jnp.maximum(deg, 1.0), 0.0)
    inv_deg = jnp.zeros((np_, 1), jnp.float32).at[:n].set(inv_deg)

    # --- node data: features in bf16, residual in f32, adjacency in int8 ----
    x_bf16 = jnp.zeros((np_, dp), jnp.bfloat16).at[:n, :din].set(x.astype(jnp.bfloat16))
    x_res = jnp.zeros((np_, hp2), jnp.float32).at[:n, :din].set(x.astype(jnp.float32))
    adj_i8 = jnp.zeros((np_, np_), jnp.int8).at[:n, :n].set(adj.astype(jnp.int8))
    # TODO(synk): on v7x the int8 adjacency could be stored/fed as float8_e4m3 to
    #             the fp8-native MXU directly.

    # --- weights (zero padding keeps padded lanes exactly zero) -------------
    w1l = _pad2d(params["w1l"], dp, hp1).astype(jnp.bfloat16)
    w1r = _pad2d(params["w1r"], dp, hp1).astype(jnp.bfloat16)
    w2l = _pad2d(params["w2l"], hp1, hp2).astype(jnp.bfloat16)
    w2r = _pad2d(params["w2r"], hp1, hp2).astype(jnp.bfloat16)
    b1 = _pad2d(params["b1"], 1, hp1)
    g1 = _pad2d(params["g1"], 1, hp1)
    be1 = _pad2d(params["be1"], 1, hp1)
    b2 = _pad2d(params["b2"], 1, hp2)
    g2 = _pad2d(params["g2"], 1, hp2)
    be2 = _pad2d(params["be2"], 1, hp2)

    # --- VMEM-residency decision per layer -----------------------------------
    src1_bytes = np_ * dp * 2
    src2_bytes = np_ * hp1 * 2
    res1 = src1_bytes <= _RESIDENT_SRC_BUDGET
    res2 = src2_bytes <= _RESIDENT_SRC_BUDGET
    cap = 48 * 1024 * 1024               # safe on v7x (64 MiB physical VMEM per TC)
    vmem1 = min(cap, 2 * src1_bytes + 16 * 1024 * 1024) if res1 else 32 * 1024 * 1024
    vmem2 = min(cap, 2 * src2_bytes + 16 * 1024 * 1024) if res2 else 32 * 1024 * 1024

    # --- layer 1: SAGEConv(din->hid) + LN + ReLU, bf16 output ----------------
    h1 = _sage_layer(adj_i8, x_bf16, x_bf16, inv_deg, None,
                     w1l, w1r, b1, g1, be1,
                     h_true=hid, out_dtype=jnp.bfloat16, tm=tm, tk=tk,
                     src_resident=res1, vmem_limit=vmem1)
    # --- layer 2: SAGEConv(hid->dout) + LN + ReLU + residual, f32 output -----
    out_pad = _sage_layer(adj_i8, h1, h1, inv_deg, x_res,
                          w2l, w2r, b2, g2, be2,
                          h_true=dout, out_dtype=jnp.float32, tm=tm, tk=tk,
                          src_resident=res2, vmem_limit=vmem2)
    return out_pad[:n, :dout]


def init_params(key, input_dim, hidden_dim, output_dim):
    ks = jax.random.split(key, 4)
    s = 0.1
    return {
        # SAGEConv(in -> hid): lin_l (with bias), lin_r (no bias)
        "w1l": jax.random.normal(ks[0], (input_dim, hidden_dim), jnp.float32) * s,
        "b1": jnp.zeros((1, hidden_dim), jnp.float32),
        "w1r": jax.random.normal(ks[1], (input_dim, hidden_dim), jnp.float32) * s,
        "g1": jnp.ones((1, hidden_dim), jnp.float32),
        "be1": jnp.zeros((1, hidden_dim), jnp.float32),
        # SAGEConv(hid -> out)
        "w2l": jax.random.normal(ks[2], (hidden_dim, output_dim), jnp.float32) * s,
        "b2": jnp.zeros((1, output_dim), jnp.float32),
        "w2r": jax.random.normal(ks[3], (hidden_dim, output_dim), jnp.float32) * s,
        "g2": jnp.ones((1, output_dim), jnp.float32),
        "be2": jnp.zeros((1, output_dim), jnp.float32),
    }


def _reference(x, adj, params):
    """Pure-JAX f32 reference of the PyTorch forward (node-mode LayerNorm)."""
    def sage(h_src, h_self, wl, b, wr):
        deg = jnp.sum(adj, axis=1, keepdims=True)
        agg = jnp.where(deg > 0.0, (adj @ h_src) / jnp.maximum(deg, 1.0), 0.0)
        return agg @ wl + b + h_self @ wr

    def ln_relu(h, g, be):
        mu = jnp.mean(h, axis=-1, keepdims=True)
        var = jnp.mean((h - mu) ** 2, axis=-1, keepdims=True)
        return jnp.maximum((h - mu) * lax.rsqrt(var + EPS) * g + be, 0.0)

    h1 = ln_relu(sage(x, x, params["w1l"], params["b1"], params["w1r"]),
                 params["g1"], params["be1"])
    h2 = ln_relu(sage(h1, h1, params["w2l"], params["b2"], params["w2r"]),
                 params["g2"], params["be2"])
    return h2 + x


if __name__ == "__main__":
    N = 200            # number of graph nodes (exercises the node-padding path)
    input_dim = 32     # must equal output_dim for the residual add
    hidden_dim = 64
    output_dim = 32

    key = jax.random.PRNGKey(0)
    kx, kadj, kp = jax.random.split(key, 3)

    x = jax.random.normal(kx, (N, input_dim), jnp.float32)
    adj = jax.random.bernoulli(kadj, p=0.15, shape=(N, N)).astype(jnp.float32)
    params = init_params(kp, input_dim, hidden_dim, output_dim)

    fwd = jax.jit(gcn_sage_residual)
    out = fwd(x, adj, params)
    jax.block_until_ready(out)

    assert out.shape == (N, output_dim)
    assert bool(jnp.all(jnp.isfinite(out)))

    # Loose tolerance: bf16 features / weights in the MXU matmuls (adjacency itself
    # is exact 0/1 and inv_deg is an exact f32 reciprocal).
    ref = _reference(x, adj, params)
    max_err = float(jnp.max(jnp.abs(out - ref)))
    assert max_err < 1e-1, f"max abs error {max_err}"

    print("KERNEL_OK")
</pallas_src>

<mosaic_0001>
module attributes {stable_mosaic.version = 11 : i64} {
  func.func @_sage_layer_kernel(%arg0: i32, %arg1: i32, %arg2: memref<128x256xi8, #tpu.memory_space<vmem>>, %arg3: memref<256x128xbf16, #tpu.memory_space<vmem>>, %arg4: memref<128x128xbf16, #tpu.memory_space<vmem>>, %arg5: memref<128x1xf32, #tpu.memory_space<vmem>>, %arg6: memref<128x128xbf16, #tpu.memory_space<vmem>>, %arg7: memref<128x128xbf16, #tpu.memory_space<vmem>>, %arg8: memref<1x128xf32, #tpu.memory_space<vmem>>, %arg9: memref<1x128xf32, #tpu.memory_space<vmem>>, %arg10: memref<1x128xf32, #tpu.memory_space<vmem>>, %arg11: memref<128x128xbf16, #tpu.memory_space<vmem>>, %arg12: memref<128x128xf32, #tpu.memory_space<vmem>>) attributes {dimension_semantics = [#tpu.dimension_semantics<parallel>, #tpu.dimension_semantics<arbitrary>], iteration_bounds = array<i64: 2, 1>, scalar_prefetch = 0 : i64, scratch_operands = 1 : i64, tpu.core_type = #tpu.core_type<tc>, window_params = [{transform_indices = @transform_0, window_bounds = array<i64: 128, 256>}, {pipeline_mode = #tpu.pipeline_mode<synchronous>, transform_indices = @transform_1, window_bounds = array<i64: 256, 128>}, {transform_indices = @transform_2, window_bounds = array<i64: 128, 128>}, {transform_indices = @transform_3, window_bounds = array<i64: 128, 1>}, {pipeline_mode = #tpu.pipeline_mode<synchronous>, transform_indices = @transform_4, window_bounds = array<i64: 128, 128>}, {pipeline_mode = #tpu.pipeline_mode<synchronous>, transform_indices = @transform_5, window_bounds = array<i64: 128, 128>}, {pipeline_mode = #tpu.pipeline_mode<synchronous>, transform_indices = @transform_6, window_bounds = array<i64: 1, 128>}, {pipeline_mode = #tpu.pipeline_mode<synchronous>, transform_indices = @transform_7, window_bounds = array<i64: 1, 128>}, {pipeline_mode = #tpu.pipeline_mode<synchronous>, transform_indices = @transform_8, window_bounds = array<i64: 1, 128>}, {transform_indices = @transform_9, window_bounds = array<i64: 128, 128>}]} {
    %c0_i32 = arith.constant 0 : i32
    %0 = arith.cmpi eq, %arg1, %c0_i32 : i32
    %1 = arith.extui %0 : i1 to i32
    %c0_i32_0 = arith.constant 0 : i32
    %2 = arith.cmpi ne, %1, %c0_i32_0 : i32
    scf.if %2 {
      %cst_9 = arith.constant 0.000000e+00 : f32
      %16 = vector.broadcast %cst_9 : f32 to vector<128x128xf32>
      %c0_10 = arith.constant 0 : index
      %c0_11 = arith.constant 0 : index
      %17 = vector.load %arg12[%c0_10, %c0_11] : memref<128x128xf32, #tpu.memory_space<vmem>>, vector<128x128xf32>
      tpu.vector_store %arg12[%c0_10, %c0_11], %16 {strides = array<i32>} : memref<128x128xf32, #tpu.memory_space<vmem>>, vector<128x128xf32>,
    } else {
    }
    %c256_i32 = arith.constant 256 : i32
    %3 = arith.muli %arg1, %c256_i32 : i32
    %4 = tpu.assume_multiple %3, 256 : i32
    %5 = arith.index_cast %4 : i32 to index
    %c0 = arith.constant 0 : index
    %6 = vector.load %arg3[%5, %c0] : memref<256x128xbf16, #tpu.memory_space<vmem>>, vector<256x128xbf16>
    %c0_1 = arith.constant 0 : index
    %c0_2 = arith.constant 0 : index
    %7 = vector.load %arg12[%c0_1, %c0_2] : memref<128x128xf32, #tpu.memory_space<vmem>>, vector<128x128xf32>
    %c0_3 = arith.constant 0 : index
    %c0_4 = arith.constant 0 : index
    %8 = vector.load %arg2[%c0_3, %c0_4] : memref<128x256xi8, #tpu.memory_space<vmem>>, vector<128x256xi8>
    %9 = arith.sitofp %8 : vector<128x256xi8> to vector<128x256xbf16>
    %cst = arith.constant dense<0.000000e+00> : vector<128x128xf32>
    %10 = tpu.matmul %9, %6, %cst {dimension_numbers = #tpu.dot_dimension_numbers<[1], [0], [0], [1], [0, 0, 1, 1], [], []>} : vector<128x256xbf16>, vector<256x128xbf16>, vector<128x128xf32> -> vector<128x128xf32>
    %11 = arith.addf %7, %10 : vector<128x128xf32>
    %c0_5 = arith.constant 0 : index
    %c0_6 = arith.constant 0 : index
    %12 = vector.load %arg12[%c0_5, %c0_6] : memref<128x128xf32, #tpu.memory_space<vmem>>, vector<128x128xf32>
    tpu.vector_store %arg12[%c0_5, %c0_6], %11 {strides = array<i32>} : memref<128x128xf32, #tpu.memory_space<vmem>>, vector<128x128xf32>,
    %c0_i32_7 = arith.constant 0 : i32
    %13 = arith.cmpi eq, %arg1, %c0_i32_7 : i32
    %14 = arith.extui %13 : i1 to i32
    %c0_i32_8 = arith.constant 0 : i32
    %15 = arith.cmpi ne, %14, %c0_i32_8 : i32
    scf.if %15 {
      %c0_9 = arith.constant 0 : index
      %c0_10 = arith.constant 0 : index
      %16 = vector.load %arg12[%c0_9, %c0_10] : memref<128x128xf32, #tpu.memory_space<vmem>>, vector<128x128xf32>
      %c0_11 = arith.constant 0 : index
      %c0_12 = arith.constant 0 : index
      %17 = vector.load %arg5[%c0_11, %c0_12] : memref<128x1xf32, #tpu.memory_space<vmem>>, vector<128x1xf32>
      %18 = vector.broadcast %17 : vector<128x1xf32> to vector<128x128xf32>
      %19 = arith.mulf %16, %18 : vector<128x128xf32>
      %20 = arith.truncf %19 : vector<128x128xf32> to vector<128x128xbf16>
      %c0_13 = arith.constant 0 : index
      %c0_14 = arith.constant 0 : index
      %21 = vector.load %arg6[%c0_13, %c0_14] : memref<128x128xbf16, #tpu.memory_space<vmem>>, vector<128x128xbf16>
      %cst_15 = arith.constant dense<0.000000e+00> : vector<128x128xf32>
      %22 = tpu.matmul %20, %21, %cst_15 {dimension_numbers = #tpu.dot_dimension_numbers<[1], [0], [0], [1], [0, 0, 1, 1], [], []>} : vector<128x128xbf16>, vector<128x128xbf16>, vector<128x128xf32> -> vector<128x128xf32>
      %c0_16 = arith.constant 0 : index
      %c0_17 = arith.constant 0 : index
      %23 = vector.load %arg4[%c0_16, %c0_17] : memref<128x128xbf16, #tpu.memory_space<vmem>>, vector<128x128xbf16>
      %c0_18 = arith.constant 0 : index
      %c0_19 = arith.constant 0 : index
      %24 = vector.load %arg7[%c0_18, %c0_19] : memref<128x128xbf16, #tpu.memory_space<vmem>>, vector<128x128xbf16>
      %cst_20 = arith.constant dense<0.000000e+00> : vector<128x128xf32>
      %25 = tpu.matmul %23, %24, %cst_20 {dimension_numbers = #tpu.dot_dimension_numbers<[1], [0], [0], [1], [0, 0, 1, 1], [], []>} : vector<128x128xbf16>, vector<128x128xbf16>, vector<128x128xf32> -> vector<128x128xf32>
      %26 = arith.addf %22, %25 : vector<128x128xf32>
      %c0_21 = arith.constant 0 : index
      %c0_22 = arith.constant 0 : index
      %27 = vector.load %arg8[%c0_21, %c0_22] : memref<1x128xf32, #tpu.memory_space<vmem>>, vector<1x128xf32>
      %28 = vector.broadcast %27 : vector<1x128xf32> to vector<128x128xf32>
      %29 = arith.addf %26, %28 : vector<128x128xf32>
      %30 = tpu.iota {dimensions = array<i32: 1>} : vector<128x128xi32>
      %c64_i32 = arith.constant 64 : i32
      %31 = vector.broadcast %c64_i32 : i32 to vector<128x128xi32>
      %32 = arith.cmpi slt, %30, %31 : vector<128x128xi32>
      %cst_23 = arith.constant 0.000000e+00 : f32
      %33 = vector.broadcast %cst_23 : f32 to vector<128x128xf32>
      %34 = arith.select %32, %29, %33 : vector<128x128xi1>, vector<128x128xf32>
      %cst_24 = arith.constant dense<0.000000e+00> : vector<128xf32>
      %35 = vector.multi_reduction <add>, %34, %cst_24 [1] : vector<128x128xf32> to vector<128xf32>
      %36 = vector.shape_cast %35 : vector<128xf32> to vector<128x1xf32>
      %cst_25 = arith.constant 1.562500e-02 : f32
      %37 = vector.broadcast %cst_25 : f32 to vector<128x1xf32>
      %38 = arith.mulf %36, %37 : vector<128x1xf32>
      %39 = vector.broadcast %38 : vector<128x1xf32> to vector<128x128xf32>
      %40 = arith.subf %29, %39 : vector<128x128xf32>
      %cst_26 = arith.constant 0.000000e+00 : f32
      %41 = vector.broadcast %cst_26 : f32 to vector<128x128xf32>
      %42 = arith.select %32, %40, %41 : vector<128x128xi1>, vector<128x128xf32>
      %43 = arith.mulf %42, %42 : vector<128x128xf32>
      %cst_27 = arith.constant dense<0.000000e+00> : vector<128xf32>
      %44 = vector.multi_reduction <add>, %43, %cst_27 [1] : vector<128x128xf32> to vector<128xf32>
      %45 = vector.shape_cast %44 : vector<128xf32> to vector<128x1xf32>
      %cst_28 = arith.constant 1.562500e-02 : f32
      %46 = vector.broadcast %cst_28 : f32 to vector<128x1xf32>
      %47 = arith.mulf %45, %46 : vector<128x1xf32>
      %cst_29 = arith.constant 9.99999974E-6 : f32
      %48 = vector.broadcast %cst_29 : f32 to vector<128x1xf32>
      %49 = arith.addf %47, %48 : vector<128x1xf32>
      %50 = math.rsqrt %49 : vector<128x1xf32>
      %51 = vector.broadcast %50 : vector<128x1xf32> to vector<128x128xf32>
      %52 = arith.mulf %42, %51 : vector<128x128xf32>
      %c0_30 = arith.constant 0 : index
      %c0_31 = arith.constant 0 : index
      %53 = vector.load %arg9[%c0_30, %c0_31] : memref<1x128xf32, #tpu.memory_space<vmem>>, vector<1x128xf32>
      %54 = vector.broadcast %53 : vector<1x128xf32> to vector<128x128xf32>
      %55 = arith.mulf %52, %54 : vector<128x128xf32>
      %c0_32 = arith.constant 0 : index
      %c0_33 = arith.constant 0 : index
      %56 = vector.load %arg10[%c0_32, %c0_33] : memref<1x128xf32, #tpu.memory_space<vmem>>, vector<1x128xf32>
      %57 = vector.broadcast %56 : vector<1x128xf32> to vector<128x128xf32>
      %58 = arith.addf %55, %57 : vector<128x128xf32>
      %cst_34 = arith.constant 0.000000e+00 : f32
      %59 = vector.broadcast %cst_34 : f32 to vector<128x128xf32>
      %60 = arith.maximumf %58, %59 : vector<128x128xf32>
      %61 = arith.truncf %60 : vector<128x128xf32> to vector<128x128xbf16>
      %c0_35 = arith.constant 0 : index
      %c0_36 = arith.constant 0 : index
      %62 = vector.load %arg11[%c0_35, %c0_36] : memref<128x128xbf16, #tpu.memory_space<vmem>>, vector<128x128xbf16>
      tpu.vector_store %arg11[%c0_35, %c0_36], %61 {strides = array<i32>} : memref<128x128xbf16, #tpu.memory_space<vmem>>, vector<128x128xbf16>,
    } else {
    }
    return
  }
  func.func @transform_0(%arg0: i32, %arg1: i32) -> (i32, i32) {
    %c0_i32 = arith.constant 0 : i32
    return %arg0, %arg1 : i32, i32
  }
  func.func @transform_1(%arg0: i32, %arg1: i32) -> (i32, i32) {
    %c0_i32 = arith.constant 0 : i32
    %c0_i32_0 = arith.constant 0 : i32
    %c0_i32_1 = arith.constant 0 : i32
    return %c0_i32, %c0_i32_0 : i32, i32
  }
  func.func @transform_2(%arg0: i32, %arg1: i32) -> (i32, i32) {
    %c0_i32 = arith.constant 0 : i32
    %c0_i32_0 = arith.constant 0 : i32
    return %arg0, %c0_i32 : i32, i32
  }
  func.func @transform_3(%arg0: i32, %arg1: i32) -> (i32, i32) {
    %c0_i32 = arith.constant 0 : i32
    %c0_i32_0 = arith.constant 0 : i32
    return %arg0, %c0_i32 : i32, i32
  }
  func.func @transform_4(%arg0: i32, %arg1: i32) -> (i32, i32) {
    %c0_i32 = arith.constant 0 : i32
    %c0_i32_0 = arith.constant 0 : i32
    %c0_i32_1 = arith.constant 0 : i32
    return %c0_i32, %c0_i32_0 : i32, i32
  }
  func.func @transform_5(%arg0: i32, %arg1: i32) -> (i32, i32) {
    %c0_i32 = arith.constant 0 : i32
    %c0_i32_0 = arith.constant 0 : i32
    %c0_i32_1 = arith.constant 0 : i32
    return %c0_i32, %c0_i32_0 : i32, i32
  }
  func.func @transform_6(%arg0: i32, %arg1: i32) -> (i32, i32) {
    %c0_i32 = arith.constant 0 : i32
    %c0_i32_0 = arith.constant 0 : i32
    %c0_i32_1 = arith.constant 0 : i32
    return %c0_i32, %c0_i32_0 : i32, i32
  }
  func.func @transform_7(%arg0: i32, %arg1: i32) -> (i32, i32) {
    %c0_i32 = arith.constant 0 : i32
    %c0_i32_0 = arith.constant 0 : i32
    %c0_i32_1 = arith.constant 0 : i32
    return %c0_i32, %c0_i32_0 : i32, i32
  }
  func.func @transform_8(%arg0: i32, %arg1: i32) -> (i32, i32) {
    %c0_i32 = arith.constant 0 : i32
    %c0_i32_0 = arith.constant 0 : i32
    %c0_i32_1 = arith.constant 0 : i32
    return %c0_i32, %c0_i32_0 : i32, i32
  }
  func.func @transform_9(%arg0: i32, %arg1: i32) -> (i32, i32) {
    %c0_i32 = arith.constant 0 : i32
    %c0_i32_0 = arith.constant 0 : i32
    return %arg0, %c0_i32 : i32, i32
  }
}

module attributes {stable_mosaic.version = 11 : i64} {
  func.func @_sage_layer_kernel(%arg0: i32, %arg1: i32, %arg2: memref<128x256xi8, #tpu.memory_space<vmem>>, %arg3: memref<256x128xbf16, #tpu.memory_space<vmem>>, %arg4: memref<128x128xbf16, #tpu.memory_space<vmem>>, %arg5: memref<128x1xf32, #tpu.memory_space<vmem>>, %arg6: memref<128x128xf32, #tpu.memory_space<vmem>>, %arg7: memref<128x128xbf16, #tpu.memory_space<vmem>>, %arg8: memref<128x128xbf16, #tpu.memory_space<vmem>>, %arg9: memref<1x128xf32, #tpu.memory_space<vmem>>, %arg10: memref<1x128xf32, #tpu.memory_space<vmem>>, %arg11: memref<1x128xf32, #tpu.memory_space<vmem>>, %arg12: memref<128x128xf32, #tpu.memory_space<vmem>>, %arg13: memref<128x128xf32, #tpu.memory_space<vmem>>) attributes {dimension_semantics = [#tpu.dimension_semantics<parallel>, #tpu.dimension_semantics<arbitrary>], iteration_bounds = array<i64: 2, 1>, scalar_prefetch = 0 : i64, scratch_operands = 1 : i64, tpu.core_type = #tpu.core_type<tc>, window_params = [{transform_indices = @transform_0, window_bounds = array<i64: 128, 256>}, {pipeline_mode = #tpu.pipeline_mode<synchronous>, transform_indices = @transform_1, window_bounds = array<i64: 256, 128>}, {transform_indices = @transform_2, window_bounds = array<i64: 128, 128>}, {transform_indices = @transform_3, window_bounds = array<i64: 128, 1>}, {transform_indices = @transform_4, window_bounds = array<i64: 128, 128>}, {pipeline_mode = #tpu.pipeline_mode<synchronous>, transform_indices = @transform_5, window_bounds = array<i64: 128, 128>}, {pipeline_mode = #tpu.pipeline_mode<synchronous>, transform_indices = @transform_6, window_bounds = array<i64: 128, 128>}, {pipeline_mode = #tpu.pipeline_mode<synchronous>, transform_indices = @transform_7, window_bounds = array<i64: 1, 128>}, {pipeline_mode = #tpu.pipeline_mode<synchronous>, transform_indices = @transform_8, window_bounds = array<i64: 1, 128>}, {pipeline_mode = #tpu.pipeline_mode<synchronous>, transform_indices = @transform_9, window_bounds = array<i64: 1, 128>}, {transform_indices = @transform_10, window_bounds = array<i64: 128, 128>}]} {
    %c0_i32 = arith.constant 0 : i32
    %0 = arith.cmpi eq, %arg1, %c0_i32 : i32
    %1 = arith.extui %0 : i1 to i32
    %c0_i32_0 = arith.constant 0 : i32
    %2 = arith.cmpi ne, %1, %c0_i32_0 : i32
    scf.if %2 {
      %cst_9 = arith.constant 0.000000e+00 : f32
      %16 = vector.broadcast %cst_9 : f32 to vector<128x128xf32>
      %c0_10 = arith.constant 0 : index
      %c0_11 = arith.constant 0 : index
      %17 = vector.load %arg13[%c0_10, %c0_11] : memref<128x128xf32, #tpu.memory_space<vmem>>, vector<128x128xf32>
      tpu.vector_store %arg13[%c0_10, %c0_11], %16 {strides = array<i32>} : memref<128x128xf32, #tpu.memory_space<vmem>>, vector<128x128xf32>,
    } else {
    }
    %c256_i32 = arith.constant 256 : i32
    %3 = arith.muli %arg1, %c256_i32 : i32
    %4 = tpu.assume_multiple %3, 256 : i32
    %5 = arith.index_cast %4 : i32 to index
    %c0 = arith.constant 0 : index
    %6 = vector.load %arg3[%5, %c0] : memref<256x128xbf16, #tpu.memory_space<vmem>>, vector<256x128xbf16>
    %c0_1 = arith.constant 0 : index
    %c0_2 = arith.constant 0 : index
    %7 = vector.load %arg13[%c0_1, %c0_2] : memref<128x128xf32, #tpu.memory_space<vmem>>, vector<128x128xf32>
    %c0_3 = arith.constant 0 : index
    %c0_4 = arith.constant 0 : index
    %8 = vector.load %arg2[%c0_3, %c0_4] : memref<128x256xi8, #tpu.memory_space<vmem>>, vector<128x256xi8>
    %9 = arith.sitofp %8 : vector<128x256xi8> to vector<128x256xbf16>
    %cst = arith.constant dense<0.000000e+00> : vector<128x128xf32>
    %10 = tpu.matmul %9, %6, %cst {dimension_numbers = #tpu.dot_dimension_numbers<[1], [0], [0], [1], [0, 0, 1, 1], [], []>} : vector<128x256xbf16>, vector<256x128xbf16>, vector<128x128xf32> -> vector<128x128xf32>
    %11 = arith.addf %7, %10 : vector<128x128xf32>
    %c0_5 = arith.constant 0 : index
    %c0_6 = arith.constant 0 : index
    %12 = vector.load %arg13[%c0_5, %c0_6] : memref<128x128xf32, #tpu.memory_space<vmem>>, vector<128x128xf32>
    tpu.vector_store %arg13[%c0_5, %c0_6], %11 {strides = array<i32>} : memref<128x128xf32, #tpu.memory_space<vmem>>, vector<128x128xf32>,
    %c0_i32_7 = arith.constant 0 : i32
    %13 = arith.cmpi eq, %arg1, %c0_i32_7 : i32
    %14 = arith.extui %13 : i1 to i32
    %c0_i32_8 = arith.constant 0 : i32
    %15 = arith.cmpi ne, %14, %c0_i32_8 : i32
    scf.if %15 {
      %c0_9 = arith.constant 0 : index
      %c0_10 = arith.constant 0 : index
      %16 = vector.load %arg13[%c0_9, %c0_10] : memref<128x128xf32, #tpu.memory_space<vmem>>, vector<128x128xf32>
      %c0_11 = arith.constant 0 : index
      %c0_12 = arith.constant 0 : index
      %17 = vector.load %arg5[%c0_11, %c0_12] : memref<128x1xf32, #tpu.memory_space<vmem>>, vector<128x1xf32>
      %18 = vector.broadcast %17 : vector<128x1xf32> to vector<128x128xf32>
      %19 = arith.mulf %16, %18 : vector<128x128xf32>
      %20 = arith.truncf %19 : vector<128x128xf32> to vector<128x128xbf16>
      %c0_13 = arith.constant 0 : index
      %c0_14 = arith.constant 0 : index
      %21 = vector.load %arg7[%c0_13, %c0_14] : memref<128x128xbf16, #tpu.memory_space<vmem>>, vector<128x128xbf16>
      %cst_15 = arith.constant dense<0.000000e+00> : vector<128x128xf32>
      %22 = tpu.matmul %20, %21, %cst_15 {dimension_numbers = #tpu.dot_dimension_numbers<[1], [0], [0], [1], [0, 0, 1, 1], [], []>} : vector<128x128xbf16>, vector<128x128xbf16>, vector<128x128xf32> -> vector<128x128xf32>
      %c0_16 = arith.constant 0 : index
      %c0_17 = arith.constant 0 : index
      %23 = vector.load %arg4[%c0_16, %c0_17] : memref<128x128xbf16, #tpu.memory_space<vmem>>, vector<128x128xbf16>
      %c0_18 = arith.constant 0 : index
      %c0_19 = arith.constant 0 : index
      %24 = vector.load %arg8[%c0_18, %c0_19] : memref<128x128xbf16, #tpu.memory_space<vmem>>, vector<128x128xbf16>
      %cst_20 = arith.constant dense<0.000000e+00> : vector<128x128xf32>
      %25 = tpu.matmul %23, %24, %cst_20 {dimension_numbers = #tpu.dot_dimension_numbers<[1], [0], [0], [1], [0, 0, 1, 1], [], []>} : vector<128x128xbf16>, vector<128x128xbf16>, vector<128x128xf32> -> vector<128x128xf32>
      %26 = arith.addf %22, %25 : vector<128x128xf32>
      %c0_21 = arith.constant 0 : index
      %c0_22 = arith.constant 0 : index
      %27 = vector.load %arg9[%c0_21, %c0_22] : memref<1x128xf32, #tpu.memory_space<vmem>>, vector<1x128xf32>
      %28 = vector.broadcast %27 : vector<1x128xf32> to vector<128x128xf32>
      %29 = arith.addf %26, %28 : vector<128x128xf32>
      %30 = tpu.iota {dimensions = array<i32: 1>} : vector<128x128xi32>
      %c32_i32 = arith.constant 32 : i32
      %31 = vector.broadcast %c32_i32 : i32 to vector<128x128xi32>
      %32 = arith.cmpi slt, %30, %31 : vector<128x128xi32>
      %cst_23 = arith.constant 0.000000e+00 : f32
      %33 = vector.broadcast %cst_23 : f32 to vector<128x128xf32>
      %34 = arith.select %32, %29, %33 : vector<128x128xi1>, vector<128x128xf32>
      %cst_24 = arith.constant dense<0.000000e+00> : vector<128xf32>
      %35 = vector.multi_reduction <add>, %34, %cst_24 [1] : vector<128x128xf32> to vector<128xf32>
      %36 = vector.shape_cast %35 : vector<128xf32> to vector<128x1xf32>
      %cst_25 = arith.constant 3.125000e-02 : f32
      %37 = vector.broadcast %cst_25 : f32 to vector<128x1xf32>
      %38 = arith.mulf %36, %37 : vector<128x1xf32>
      %39 = vector.broadcast %38 : vector<128x1xf32> to vector<128x128xf32>
      %40 = arith.subf %29, %39 : vector<128x128xf32>
      %cst_26 = arith.constant 0.000000e+00 : f32
      %41 = vector.broadcast %cst_26 : f32 to vector<128x128xf32>
      %42 = arith.select %32, %40, %41 : vector<128x128xi1>, vector<128x128xf32>
      %43 = arith.mulf %42, %42 : vector<128x128xf32>
      %cst_27 = arith.constant dense<0.000000e+00> : vector<128xf32>
      %44 = vector.multi_reduction <add>, %43, %cst_27 [1] : vector<128x128xf32> to vector<128xf32>
      %45 = vector.shape_cast %44 : vector<128xf32> to vector<128x1xf32>
      %cst_28 = arith.constant 3.125000e-02 : f32
      %46 = vector.broadcast %cst_28 : f32 to vector<128x1xf32>
      %47 = arith.mulf %45, %46 : vector<128x1xf32>
      %cst_29 = arith.constant 9.99999974E-6 : f32
      %48 = vector.broadcast %cst_29 : f32 to vector<128x1xf32>
      %49 = arith.addf %47, %48 : vector<128x1xf32>
      %50 = math.rsqrt %49 : vector<128x1xf32>
      %51 = vector.broadcast %50 : vector<128x1xf32> to vector<128x128xf32>
      %52 = arith.mulf %42, %51 : vector<128x128xf32>
      %c0_30 = arith.constant 0 : index
      %c0_31 = arith.constant 0 : index
      %53 = vector.load %arg10[%c0_30, %c0_31] : memref<1x128xf32, #tpu.memory_space<vmem>>, vector<1x128xf32>
      %54 = vector.broadcast %53 : vector<1x128xf32> to vector<128x128xf32>
      %55 = arith.mulf %52, %54 : vector<128x128xf32>
      %c0_32 = arith.constant 0 : index
      %c0_33 = arith.constant 0 : index
      %56 = vector.load %arg11[%c0_32, %c0_33] : memref<1x128xf32, #tpu.memory_space<vmem>>, vector<1x128xf32>
      %57 = vector.broadcast %56 : vector<1x128xf32> to vector<128x128xf32>
      %58 = arith.addf %55, %57 : vector<128x128xf32>
      %cst_34 = arith.constant 0.000000e+00 : f32
      %59 = vector.broadcast %cst_34 : f32 to vector<128x128xf32>
      %60 = arith.maximumf %58, %59 : vector<128x128xf32>
      %c0_35 = arith.constant 0 : index
      %c0_36 = arith.constant 0 : index
      %61 = vector.load %arg6[%c0_35, %c0_36] : memref<128x128xf32, #tpu.memory_space<vmem>>, vector<128x128xf32>
      %62 = arith.addf %60, %61 : vector<128x128xf32>
      %c0_37 = arith.constant 0 : index
      %c0_38 = arith.constant 0 : index
      %63 = vector.load %arg12[%c0_37, %c0_38] : memref<128x128xf32, #tpu.memory_space<vmem>>, vector<128x128xf32>
      tpu.vector_store %arg12[%c0_37, %c0_38], %62 {strides = array<i32>} : memref<128x128xf32, #tpu.memory_space<vmem>>, vector<128x128xf32>,
    } else {
    }
    return
  }
  func.func @transform_0(%arg0: i32, %arg1: i32) -> (i32, i32) {
    %c0_i32 = arith.constant 0 : i32
    return %arg0, %arg1 : i32, i32
  }
  func.func @transform_1(%arg0: i32, %arg1: i32) -> (i32, i32) {
    %c0_i32 = arith.constant 0 : i32
    %c0_i32_0 = arith.constant 0 : i32
    %c0_i32_1 = arith.constant 0 : i32
    return %c0_i32, %c0_i32_0 : i32, i32
  }
  func.func @transform_2(%arg0: i32, %arg1: i32) -> (i32, i32) {
    %c0_i32 = arith.constant 0 : i32
    %c0_i32_0 = arith.constant 0 : i32
    return %arg0, %c0_i32 : i32, i32
  }
  func.func @transform_3(%arg0: i32, %arg1: i32) -> (i32, i32) {
    %c0_i32 = arith.constant 0 : i32
    %c0_i32_0 = arith.constant 0 : i32
    return %arg0, %c0_i32 : i32, i32
  }
  func.func @transform_4(%arg0: i32, %arg1: i32) -> (i32, i32) {
    %c0_i32 = arith.constant 0 : i32
    %c0_i32_0 = arith.constant 0 : i32
    return %arg0, %c0_i32 : i32, i32
  }
  func.func @transform_5(%arg0: i32, %arg1: i32) -> (i32, i32) {
    %c0_i32 = arith.constant 0 : i32
    %c0_i32_0 = arith.constant 0 : i32
    %c0_i32_1 = arith.constant 0 : i32
    return %c0_i32, %c0_i32_0 : i32, i32
  }
  func.func @transform_6(%arg0: i32, %arg1: i32) -> (i32, i32) {
    %c0_i32 = arith.constant 0 : i32
    %c0_i32_0 = arith.constant 0 : i32
    %c0_i32_1 = arith.constant 0 : i32
    return %c0_i32, %c0_i32_0 : i32, i32
  }
  func.func @transform_7(%arg0: i32, %arg1: i32) -> (i32, i32) {
    %c0_i32 = arith.constant 0 : i32
    %c0_i32_0 = arith.constant 0 : i32
    %c0_i32_1 = arith.constant 0 : i32
    return %c0_i32, %c0_i32_0 : i32, i32
  }
  func.func @transform_8(%arg0: i32, %arg1: i32) -> (i32, i32) {
    %c0_i32 = arith.constant 0 : i32
    %c0_i32_0 = arith.constant 0 : i32
    %c0_i32_1 = arith.constant 0 : i32
    return %c0_i32, %c0_i32_0 : i32, i32
  }
  func.func @transform_9(%arg0: i32, %arg1: i32) -> (i32, i32) {
    %c0_i32 = arith.constant 0 : i32
    %c0_i32_0 = arith.constant 0 : i32
    %c0_i32_1 = arith.constant 0 : i32
    return %c0_i32, %c0_i32_0 : i32, i32
  }
  func.func @transform_10(%arg0: i32, %arg1: i32) -> (i32, i32) {
    %c0_i32 = arith.constant 0 : i32
    %c0_i32_0 = arith.constant 0 : i32
    return %arg0, %c0_i32 : i32, i32
  }
}

</mosaic_0001>

<bundles_post_ra>
// kernel: gcn_sage_residual.2
= control target key start
LH: loop header
LB: loop body
LE: loop exit
PB: predicated region body
PF: predicated region fallthrough
CT: control target
= control target key end

     0   :  { %s2221_s30 = smov 0   ;;  %s2223_s10 = smov 0   ;;  %s2672_s0 = inlined_call_operand.vmem [shape: s8[256,256], index: 0, kind: input, shape index: {}]   ;;  %s2673_s1 = inlined_call_operand.vmem [shape: bf16[256,128], index: 1, kind: input, shape index: {}, may-alias: {1,2}]   ;;  %s2674_s2 = inlined_call_operand.vmem [shape: bf16[256,128], index: 2, kind: input, shape index: {}, may-alias: {1,2}]   ;;  %s2675_s3 = inlined_call_operand.vmem [shape: f32[256,1], index: 3, kind: input, shape index: {}]   ;;  %s2676_s4 = inlined_call_operand.vmem [shape: bf16[128,128], index: 4, kind: input, shape index: {}]   ;;  %s2677_s5 = inlined_call_operand.vmem [shape: bf16[128,128], index: 5, kind: input, shape index: {}]   ;;  %s2678_s6 = inlined_call_operand.vmem [shape: f32[1,128], index: 6, kind: input, shape index: {}]   ;;  %s2679_s7 = inlined_call_operand.vmem [shape: f32[1,128], index: 7, kind: input, shape index: {}]   ;;  %s2680_s8 = inlined_call_operand.vmem [shape: f32[1,128], index: 8, kind: input, shape index: {}]   ;;  %s2681_s9 = inlined_call_operand.vmem [shape: bf16[256,128], index: 9, kind: output, shape index: {}]  }
   0x1   :  { %s2225_s11 = smov 0  }
   0x2 LB: > { %s31_s12 = sadd.s32 1, %s2164_s10  ;;  %p1736_p0 = scmp.ge.s32.totalorder %s2168_s11, 1  ;;  %s2168_s11 = sphi %s2225_s11, %s19_s11   ;;  %s2164_s10 = sphi %s2223_s10, %s2683_s10   ;;  %s2160_s30 = sphi %s2221_s30, %s2682_s30  }
   0x3   : > { %p33_p1 = scmp.ge.s32.totalorder %s31_s12, 2  ;;  %p330_p2 = scmp.lt.s32.totalorder %s2168_s11, 3 }
   0x5   : > { %s2685_s12 = smov (%p33_p1, %s31_s12), 0  ;;  %p331_p3 = pnand %p1736_p0, %p330_p2 }
   0x6   : > { %v2074_v0 = vld [vmem:[%s2673_s1 + $0x40] sm:$0xff] (!%p331_p3)   ;;  %s1737_s15 = sshll.u32 (!%p331_p3), %s2160_s30, 2  ;;  %v2076_v2 = vld [vmem:[%s2673_s1 + $0x48] sm:$0xff] (!%p331_p3)   ;;  %v2170_v4 = vmov (!%p331_p3), 0   ;;  %v2078_v5 = vld [vmem:[%s2673_s1 + $0x50] sm:$0xff] (!%p331_p3)   ;;  %s1740_s24 = sshll.u32 (!%p331_p3), %s2160_s30, 4 }
   0x7   : > { %334 = sbr.rel (%p331_p3) target bundleno = 855 (0x357), region = 56  ;;  %v2075_v1 = vld [vmem:[%s2673_s1] sm:$0xff] (!%p331_p3)   ;;  %p383_p4 = scmp.lt.s32.totalorder (!%p331_p3), %s1737_s15, 7  ;;  %1871 = vmatprep.subr.bf16.mxu0 (!%p331_p3), %v2074_v0  ;;  %v2077_v3 = vld [vmem:[%s2673_s1 + $0x8] sm:$0xff] (!%p331_p3)   ;;  %2072 = vset.pattern.permute.xlu0 (!%p331_p3), %v2170_v4  ;;  %v2079_v6 = vld [vmem:[%s2673_s1 + $0x10] sm:$0xff] (!%p331_p3)  }
   0x8   : > { %1872 = vmatpush3.bf16.msra.mxu0 (!%p331_p3), %v2075_v1  ;;  %2073 = vset.pattern.permute.xlu1 (!%p331_p3), %v2170_v4  ;;  %p394_p5 = scmp.lt.s32.totalorder (!%p331_p3), %s1740_s24, 31  ;;  %v2080_v7 = vld [vmem:[%s2673_s1 + $0x58] sm:$0xff] (!%p331_p3)   ;;  %v2082_v9 = vld [vmem:[%s2673_s1 + $0x60] sm:$0xff] (!%p331_p3)   ;;  %v2084_v11 = vld [vmem:[%s2673_s1 + $0x68] sm:$0xff] (!%p331_p3)  }
   0x9   : > { %1873 = vmatprep.subr.bf16.mxu0 (!%p331_p3), %v2076_v2  ;;  %v2081_v8 = vld [vmem:[%s2673_s1 + $0x18] sm:$0xff] (!%p331_p3)   ;;  %v2083_v10 = vld [vmem:[%s2673_s1 + $0x20] sm:$0xff] (!%p331_p3)   ;;  %v2085_v15 = vld [vmem:[%s2673_s1 + $0x28] sm:$0xff] (!%p331_p3)  }
   0xa   : > { %v2086_v17 = vld [vmem:[%s2673_s1 + $0x70] sm:$0xff] (!%p331_p3)   ;;  %v2088_v21 = vld [vmem:[%s2673_s1 + $0x78] sm:$0xff] (!%p331_p3)   ;;  %v2090_v23 = vld [vmem:[%s2677_s5] sm:$0xff] (!%p331_p3)  }
   0xb   : > { %v2087_v20 = vld [vmem:[%s2673_s1 + $0x30] sm:$0xff] (!%p331_p3)   ;;  %v2089_v24 = vld [vmem:[%s2673_s1 + $0x38] sm:$0xff] (!%p331_p3)   ;;  %v2091_v25 = vld [vmem:[%s2677_s5 + $0x8] sm:$0xff] (!%p331_p3)   ;;  %1967 = vmatprep.subr.bf16.mxu1 (!%p331_p3), %v2090_v23 }
   0xc   : > { %1874 = vmatpush3.bf16.msra.mxu0 (!%p331_p3), %v2077_v3  ;;  %1968 = vmatpush3.bf16.msra.mxu1 (!%p331_p3), %v2090_v23  ;;  %v2092_v28 = vld [vmem:[%s2677_s5 + $0x10] sm:$0xff] (!%p331_p3)   ;;  %v2093_v33 = vld [vmem:[%s2677_s5 + $0x18] sm:$0xff] (!%p331_p3)   ;;  %v2094_v38 = vld [vmem:[%s2677_s5 + $0x20] sm:$0xff] (!%p331_p3)  }
   0xd   : > { %1875 = vmatprep.subr.bf16.mxu0 (!%p331_p3), %v2078_v5  ;;  %1969 = vmatprep.subr.bf16.mxu1 (!%p331_p3), %v2091_v25  ;;  %v2095_v44 = vld [vmem:[%s2677_s5 + $0x28] sm:$0xff] (!%p331_p3)   ;;  %v2096_v47 = vld [vmem:[%s2677_s5 + $0x30] sm:$0xff] (!%p331_p3)   ;;  %v2097_v52 = vld [vmem:[%s2677_s5 + $0x38] sm:$0xff] (!%p331_p3)  }
   0xe   : > { %s2687_s15 = smov (!%p383_p4, %s1737_s15), 7  ;;  %s2689_s24 = smov (!%p394_p5, %s1740_s24), 31  ;;  %v2100_v54 = vld [vmem:[%s2676_s4] sm:$0xff]   ;;  %v2101_v58 = vld [vmem:[%s2676_s4 + $0x8] sm:$0xff]   ;;  %v2104_v61 = vld [vmem:[%s2676_s4 + $0x10] sm:$0xff]  }
   0xf   : > { %s1807_s29 = sshll.u32 %s2687_s15, 4  ;;  %s1743_s17 = sshll.u32 %s2689_s24, 3  ;;  %v2105_v1 = vld [vmem:[%s2676_s4 + $0x18] sm:$0xff]  }
  0x10   : > { %1876 = vmatpush3.bf16.msra.mxu0 %v2079_v6  ;;  %s2276_s20 = scalar_lea.vmem %s2672_s0, %s1807_s29  ;;  %s2284_s25 = scalar_lea.vmem %s2675_s3, %s1743_s17  ;;  %1970 = vmatpush3.bf16.msra.mxu1 %v2091_v25 }
  0x11   : > { %1877 = vmatprep.subr.bf16.mxu0 %v2080_v7  ;;  %v486_v12 = vld [vmem:[%s2276_s20 + $0x8] sm:$0xff]  ;;  %v753_v14 = vld [vmem:[%s2284_s25] sm:$0xff]  ;;  %v755_v16 = vld [vmem:[%s2284_s25 + $0x10] sm:$0xff]  ;;  %s1741_s27 = sshll.u32 %s2689_s24, 2  ;;  %1971 = vmatprep.subr.bf16.mxu1 %v2092_v28 }
  0x12   : > { %v494_v13 = vunpack.c.l.s8.bf16 %v486_v12  ;;  %771 = vperm.xlu0 %2072, %v753_v14   ;;  %781 = vperm.xlu1 %2073, %v755_v16   ;;  %v754_v18 = vld [vmem:[%s2284_s25 + $0x8] sm:$0xff]  ;;  %v756_v19 = vld [vmem:[%s2284_s25 + $0x18] sm:$0xff]  ;;  %v757_v22 = vld [vmem:[%s2284_s25 + $0x20] sm:$0xff]  ;;  %s2328_s30 = scalar_lea.vmem %s2674_s2, %s1741_s27  ;;  %v496_v32 = vunpack.c.h.s8.bf16 %v486_v12  ;;  %s2616_s21 = scalar_lea.vmem %s2681_s9, %s1741_s27 }
  0x13   : > { %v758_v26 = vld [vmem:[%s2284_s25 + $0x28] sm:$0xff]  ;;  %v485_v27 = vld [vmem:[%s2276_s20] sm:$0xff]  ;;  %v759_v29 = vld [vmem:[%s2284_s25 + $0x30] sm:$0xff] }
  0x14   : > { %1878 = vmatpush3.bf16.msra.mxu0 %v2081_v8  ;;  %637 = vmatprep.mubr.bf16.mxu0 %v494_v13  ;;  %v493_v30 = vunpack.c.l.s8.bf16 %v485_v27  ;;  %v760_v31 = vld [vmem:[%s2284_s25 + $0x38] sm:$0xff]  ;;  %v2098_v34 = vld [vmem:[%s2328_s30] sm:$0xff]   ;;  %v762_v36 = vld [vmem:[%s2284_s25 + $0x48] sm:$0xff]  ;;  %v495_v40 = vunpack.c.h.s8.bf16 %v485_v27 }
  0x15   : > { %1879 = vmatprep.subr.bf16.mxu0 %v2082_v9  ;;  %v761_v35 = vld [vmem:[%s2284_s25 + $0x40] sm:$0xff]  ;;  %1983 = vmatprep.mubr.bf16.mxu1 %v2098_v34  ;;  %v488_v37 = vld [vmem:[%s2276_s20 + $0x18] sm:$0xff]  ;;  %v763_v39 = vld [vmem:[%s2284_s25 + $0x50] sm:$0xff] }
  0x16   : > { %776 = vperm.xlu0 %2072, %v754_v18   ;;  %786 = vperm.xlu1 %2073, %v756_v19   ;;  %v764_v41 = vld [vmem:[%s2284_s25 + $0x58] sm:$0xff]  ;;  %v498_v42 = vunpack.c.l.s8.bf16 %v488_v37  ;;  %v765_v43 = vld [vmem:[%s2284_s25 + $0x60] sm:$0xff]  ;;  %v766_v45 = vld [vmem:[%s2284_s25 + $0x68] sm:$0xff]  ;;  %v500_v51 = vunpack.c.h.s8.bf16 %v488_v37 }
  0x17   : > { %1972 = vmatpush3.bf16.msra.mxu1 %v2092_v28  ;;  %v487_v46 = vld [vmem:[%s2276_s20 + $0x10] sm:$0xff]  ;;  %v768_v50 = vld [vmem:[%s2284_s25 + $0x78] sm:$0xff]  ;;  %v490_v53 = vld [vmem:[%s2276_s20 + $0x28] sm:$0xff] }
  0x18   : > { %1880 = vmatpush3.bf16.msra.mxu0 %v2083_v10  ;;  %1973 = vmatprep.subr.bf16.mxu1 %v2093_v33  ;;  %v767_v48 = vld [vmem:[%s2284_s25 + $0x70] sm:$0xff]  ;;  %v497_v49 = vunpack.c.l.s8.bf16 %v487_v46  ;;  %v499_v55 = vunpack.c.h.s8.bf16 %v487_v46  ;;  %v2099_v56 = vld [vmem:[%s2328_s30 + $0x8] sm:$0xff]   ;;  %v502_v57 = vunpack.c.l.s8.bf16 %v490_v53  ;;  %v489_v60 = vld [vmem:[%s2276_s20 + $0x20] sm:$0xff]  ;;  %v504_v0 = vunpack.c.h.s8.bf16 %v490_v53 }
  0x19   : > { %1881 = vmatprep.subr.bf16.mxu0 %v2084_v11  ;;  %v2102_v59 = vld [vmem:[%s2328_s30 + $0x10] sm:$0xff]   ;;  %v501_v62 = vunpack.c.l.s8.bf16 %v489_v60  ;;  %v2103_v63 = vld [vmem:[%s2328_s30 + $0x18] sm:$0xff]   ;;  %v503_v3 = vunpack.c.h.s8.bf16 %v489_v60  ;;  %v2106_v9 = vld [vmem:[%s2328_s30 + $0x20] sm:$0xff]  }
  0x1a   : > { %791 = vperm.xlu0 %2072, %v757_v22   ;;  %796 = vperm.xlu1 %2073, %v758_v26   ;;  %v492_v2 = vld [vmem:[%s2276_s20 + $0x38] sm:$0xff]  ;;  %v491_v5 = vld [vmem:[%s2276_s20 + $0x30] sm:$0xff]  ;;  %v2107_v10 = vld [vmem:[%s2328_s30 + $0x28] sm:$0xff]  }
  0x1b   : > { %1974 = vmatpush3.bf16.msra.mxu1 %v2093_v33  ;;  %v506_v4 = vunpack.c.l.s8.bf16 %v492_v2  ;;  %v505_v6 = vunpack.c.l.s8.bf16 %v491_v5  ;;  %v508_v7 = vunpack.c.h.s8.bf16 %v492_v2  ;;  %v507_v8 = vunpack.c.h.s8.bf16 %v491_v5  ;;  %v2108_v11 = vld [vmem:[%s2676_s4 + $0x20] sm:$0xff]   ;;  %v2109_v12 = vld [vmem:[%s2676_s4 + $0x28] sm:$0xff]   ;;  %v2110_v13 = vld [vmem:[%s2328_s30 + $0x30] sm:$0xff]  }
  0x1c   : > { %1882 = vmatpush3.bf16.msra.mxu0 %v2085_v15  ;;  %1975 = vmatprep.subr.bf16.mxu1 %v2094_v38  ;;  %v2111_v14 = vld [vmem:[%s2328_s30 + $0x38] sm:$0xff]   ;;  %v2112_v15 = vld [vmem:[%s2676_s4 + $0x30] sm:$0xff]  }
  0x1d   : > { %1883 = vmatprep.subr.bf16.mxu0 %v2086_v17  ;;  %v2113_v16 = vld [vmem:[%s2676_s4 + $0x38] sm:$0xff]  }
  0x1e   : > { %801 = vperm.xlu0 %2072, %v759_v29   ;;  %806 = vperm.xlu1 %2073, %v760_v31  }
  0x1f   : > { %1976 = vmatpush3.bf16.msra.mxu1 %v2094_v38 }
  0x20   : > { %1884 = vmatpush3.bf16.msra.mxu0 %v2087_v20  ;;  %1977 = vmatprep.subr.bf16.mxu1 %v2095_v44 }
  0x21   : > { %1885 = vmatprep.subr.bf16.mxu0 %v2088_v21 }
  0x22   : > { %811 = vperm.xlu0 %2072, %v761_v35   ;;  %816 = vperm.xlu1 %2073, %v762_v36  }
  0x23   : > { %1978 = vmatpush3.bf16.msra.mxu1 %v2095_v44 }
  0x24   : > { %1886 = vmatpush3.bf16.msra.mxu0 %v2089_v24  ;;  %1979 = vmatprep.subr.bf16.mxu1 %v2096_v47 }
  0x26   : > { %821 = vperm.xlu0 %2072, %v763_v39   ;;  %826 = vperm.xlu1 %2073, %v764_v41  }
  0x27   : > { %638 = vmatmul.mubr.bf16.vlgmr.msra.gmra.mrb[0].mxu0 %v493_v30  ;;  %1980 = vmatpush3.bf16.msra.mxu1 %v2096_v47 }
  0x28   : > { %645 = vmatprep.mubr.bf16.mxu0 %v496_v32  ;;  %1981 = vmatprep.subr.bf16.mxu1 %v2097_v52 }
  0x2a   : > { %831 = vperm.xlu0 %2072, %v765_v43   ;;  %836 = vperm.xlu1 %2073, %v766_v45  }
  0x2b   : > { %1982 = vmatpush3.bf16.msra.mxu1 %v2097_v52 }
  0x2c   : > { %1999 = vmatprep.subr.bf16.mxu1 %v2100_v54 }
  0x2e   : > { %841 = vperm.xlu0 %2072, %v767_v48   ;;  %846 = vperm.xlu1 %2073, %v768_v50  }
  0x2f   : > { %646 = vmatmul.mubr.bf16.gmra.mrb[4].mxu0 %v495_v40  ;;  %1984 = vmatmul.mubr.bf16.vlgmr.msra.gmra.mrb[0].mxu1 %v2099_v56 }
  0x30   : > { %653 = vmatprep.mubr.bf16.mxu0 %v498_v42  ;;  %2000 = vmatpush3.bf16.msra.mxu1 %v2100_v54 }
  0x31   : > { %2001 = vmatprep.subr.bf16.mxu1 %v2101_v58  ;;  %1987 = vmatprep.mubr.bf16.mxu1 %v2102_v59 }
  0x34   : > { %2002 = vmatpush3.bf16.msra.mxu1 %v2101_v58 }
  0x35   : > { %2003 = vmatprep.subr.bf16.mxu1 %v2104_v61 }
  0x37   : > { %654 = vmatmul.mubr.bf16.gmra.mrb[8].mxu0 %v497_v49  ;;  %1988 = vmatmul.mubr.bf16.gmra.mrb[4].mxu1 %v2103_v63 }
  0x38   : > { %661 = vmatprep.mubr.bf16.mxu0 %v500_v51  ;;  %2004 = vmatpush3.bf16.msra.mxu1 %v2104_v61 }
  0x39   : > { %2005 = vmatprep.subr.bf16.mxu1 %v2105_v1  ;;  %1991 = vmatprep.mubr.bf16.mxu1 %v2106_v9 }
  0x3c   : > { %2006 = vmatpush3.bf16.msra.mxu1 %v2105_v1 }
  0x3d   : > { %2007 = vmatprep.subr.bf16.mxu1 %v2108_v11 }
  0x3f   : > { %662 = vmatmul.mubr.bf16.gmra.mrb[12].mxu0 %v499_v55  ;;  %1992 = vmatmul.mubr.bf16.gmra.mrb[8].mxu1 %v2107_v10 }
  0x40   : > { %669 = vmatprep.mubr.bf16.mxu0 %v502_v57  ;;  %2008 = vmatpush3.bf16.msra.mxu1 %v2108_v11 }
  0x41   : > { %2009 = vmatprep.subr.bf16.mxu1 %v2109_v12  ;;  %1995 = vmatprep.mubr.bf16.mxu1 %v2110_v13 }
  0x44   : > { %2010 = vmatpush3.bf16.msra.mxu1 %v2109_v12 }
  0x45   : > { %2011 = vmatprep.subr.bf16.mxu1 %v2112_v15 }
  0x47   : > { %670 = vmatmul.mubr.bf16.gmra.mrb[16].mxu0 %v501_v62  ;;  %1996 = vmatmul.mubr.bf16.gmra.mrb[12].mxu1 %v2111_v14 }
  0x48   : > { %677 = vmatprep.mubr.bf16.mxu0 %v504_v0  ;;  %2012 = vmatpush3.bf16.msra.mxu1 %v2112_v15 }
  0x49   : > { %2013 = vmatprep.subr.bf16.mxu1 %v2113_v16 }
  0x4c   : > { %2014 = vmatpush3.bf16.msra.mxu1 %v2113_v16 }
  0x4f   : > { %678 = vmatmul.mubr.bf16.gmra.mrb[20].mxu0 %v503_v3 }
  0x50   : > { %685 = vmatprep.mubr.bf16.mxu0 %v506_v4 }
  0x57   : > { %686 = vmatmul.mubr.bf16.gmra.mrb[24].mxu0 %v505_v6 }
  0x58   : > { %693 = vmatprep.mubr.bf16.mxu0 %v508_v7 }
  0x5f   : > { %694 = vmatmul.mubr.bf16.gmra.mrb[28].mxu0 %v507_v8 }
  0x91   : > { %v772_v17 = vpop.permute.xlu0 %771  ;;  %v782_v27 = vpop.permute.xlu1 %781 }
  0x95   : > { %v777_v24 = vpop.permute.xlu0 %776  ;;  %v787_v35 = vpop.permute.xlu1 %786 }
  0x99   : > { %v792_v45 = vpop.permute.xlu0 %791  ;;  %v797_v46 = vpop.permute.xlu1 %796 }
  0x9d   : > { %v802_v56 = vpop.permute.xlu0 %801  ;;  %v807_v57 = vpop.permute.xlu1 %806 }
  0xa1   : > { %v812_v3 = vpop.permute.xlu0 %811  ;;  %v817_v4 = vpop.permute.xlu1 %816 }
  0xa5   : > { %v822_v14 = vpop.permute.xlu0 %821  ;;  %v827_v15 = vpop.permute.xlu1 %826 }
  0xfa   : > { %v1887_v18 = vpop.f32.mrb[0].mxu0 }
  0xfb   : > { %v1888_v19 = vpop.f32.mrb[1].mxu0 }
  0xfc   : > { %v1889_v20 = vadd.f32 %v1888_v19, %v1887_v18  ;;  %v1890_v21 = vpop.f32.mrb[2].mxu0 }
  0xfd   : > { %v1891_v22 = vpop.f32.mrb[3].mxu0 }
  0xfe   : > { %v1892_v23 = vadd.f32 %v1891_v22, %v1890_v21  ;;  %v849_v25 = vmul.f32 %v1889_v20, %v772_v17 }
 0x100   : > { %v850_v26 = vmul.f32 %v1892_v23, %v777_v24 }
 0x102   : > { %v1893_v28 = vpop.f32.mrb[4].mxu0  ;;  %v865_v29 = vpack.c.bf16 %v850_v26, %v849_v25  ;;  %v832_v25 = vpop.permute.xlu0 %831 }
 0x103   : > { %v1894_v30 = vpop.f32.mrb[5].mxu0  ;;  %v837_v26 = vpop.permute.xlu1 %836 }
 0x104   : > { %v1895_v31 = vadd.f32 %v1894_v30, %v1893_v28  ;;  %v1896_v32 = vpop.f32.mrb[6].mxu0  ;;  %2015 = vmatprep.mubr.bf16.mxu1 %v865_v29 }
 0x105   : > { %v1897_v33 = vpop.f32.mrb[7].mxu0 }
 0x106   : > { %v1898_v34 = vadd.f32 %v1897_v33, %v1896_v32  ;;  %v851_v36 = vmul.f32 %v1895_v31, %v782_v27 }
 0x108   : > { %v852_v37 = vmul.f32 %v1898_v34, %v787_v35 }
 0x10a   : > { %v866_v38 = vpack.c.bf16 %v852_v37, %v851_v36  ;;  %v1899_v39 = vpop.f32.mrb[8].mxu0  ;;  %v842_v36 = vpop.permute.xlu0 %841 }
 0x10b   : > { %v1900_v40 = vpop.f32.mrb[9].mxu0  ;;  %v847_v37 = vpop.permute.xlu1 %846 }
 0x10c   : > { %v1901_v41 = vadd.f32 %v1900_v40, %v1899_v39  ;;  %v1902_v42 = vpop.f32.mrb[10].mxu0  ;;  %2016 = vmatmul.mubr.bf16.vlgmr.msra.gmra.mrb[0].mxu1 %v866_v38 }
 0x10d   : > { %v1903_v43 = vpop.f32.mrb[11].mxu0 }
 0x10e   : > { %v1904_v44 = vadd.f32 %v1903_v43, %v1902_v42  ;;  %v853_v47 = vmul.f32 %v1901_v41, %v792_v45  ;;  %v1282_v41 = vlaneseq  ;;  %v1786_v43 = vld [vmem:[%s2678_s6] ss:$0 sm:$0xff] }
 0x110   : > { %v854_v48 = vmul.f32 %v1904_v44, %v797_v46  ;;  %v2392_v42 = vand.u32 127, %v1282_v41 }
 0x112   : > { %v1905_v49 = vpop.f32.mrb[12].mxu0  ;;  %v867_v50 = vpack.c.bf16 %v854_v48, %v853_v47  ;;  %vm1284_vm0 = vcmp.lt.s32.totalorder %v2392_v42, 64 }
 0x113   : > { %v1906_v51 = vpop.f32.mrb[13].mxu0 }
 0x114   : > { %v1907_v52 = vadd.f32 %v1906_v51, %v1905_v49  ;;  %v1908_v53 = vpop.f32.mrb[14].mxu0  ;;  %2019 = vmatprep.mubr.bf16.mxu1 %v867_v50 }
 0x115   : > { %v1909_v54 = vpop.f32.mrb[15].mxu0 }
 0x116   : > { %v1910_v55 = vadd.f32 %v1909_v54, %v1908_v53  ;;  %v855_v58 = vmul.f32 %v1907_v52, %v802_v56 }
 0x118   : > { %v856_v59 = vmul.f32 %v1910_v55, %v807_v57 }
 0x11a   : > { %v1911_v60 = vpop.f32.mrb[16].mxu0  ;;  %v868_v61 = vpack.c.bf16 %v856_v59, %v855_v58 }
 0x11b   : > { %v1912_v62 = vpop.f32.mrb[17].mxu0 }
 0x11c   : > { %v1913_v63 = vadd.f32 %v1912_v62, %v1911_v60  ;;  %v1914_v0 = vpop.f32.mrb[18].mxu0  ;;  %2020 = vmatmul.mubr.bf16.gmra.mrb[4].mxu1 %v868_v61 }
 0x11d   : > { %v1915_v1 = vpop.f32.mrb[19].mxu0 }
 0x11e   : > { %v1916_v2 = vadd.f32 %v1915_v1, %v1914_v0  ;;  %v857_v5 = vmul.f32 %v1913_v63, %v812_v3 }
 0x120   : > { %v858_v6 = vmul.f32 %v1916_v2, %v817_v4 }
 0x122   : > { %v1917_v7 = vpop.f32.mrb[20].mxu0  ;;  %v869_v8 = vpack.c.bf16 %v858_v6, %v857_v5 }
 0x123   : > { %v1918_v9 = vpop.f32.mrb[21].mxu0 }
 0x124   : > { %v1919_v10 = vadd.f32 %v1918_v9, %v1917_v7  ;;  %v1920_v11 = vpop.f32.mrb[22].mxu0  ;;  %2023 = vmatprep.mubr.bf16.mxu1 %v869_v8 }
 0x125   : > { %v1921_v12 = vpop.f32.mrb[23].mxu0 }
 0x126   : > { %v1922_v13 = vadd.f32 %v1921_v12, %v1920_v11  ;;  %v859_v16 = vmul.f32 %v1919_v10, %v822_v14 }
 0x128   : > { %v860_v17 = vmul.f32 %v1922_v13, %v827_v15 }
 0x12a   : > { %v1923_v18 = vpop.f32.mrb[24].mxu0  ;;  %v870_v19 = vpack.c.bf16 %v860_v17, %v859_v16 }
 0x12b   : > { %v1924_v20 = vpop.f32.mrb[25].mxu0 }
 0x12c   : > { %v1925_v21 = vadd.f32 %v1924_v20, %v1923_v18  ;;  %v1926_v22 = vpop.f32.mrb[26].mxu0  ;;  %2024 = vmatmul.mubr.bf16.gmra.mrb[8].mxu1 %v870_v19 }
 0x12d   : > { %v1927_v23 = vpop.f32.mrb[27].mxu0 }
 0x12e   : > { %v1928_v24 = vadd.f32 %v1927_v23, %v1926_v22  ;;  %v861_v27 = vmul.f32 %v1925_v21, %v832_v25 }
 0x130   : > { %v862_v28 = vmul.f32 %v1928_v24, %v837_v26 }
 0x132   : > { %v1929_v29 = vpop.f32.mrb[28].mxu0  ;;  %v871_v30 = vpack.c.bf16 %v862_v28, %v861_v27 }
 0x133   : > { %v1930_v31 = vpop.f32.mrb[29].mxu0 }
 0x134   : > { %v1931_v32 = vadd.f32 %v1930_v31, %v1929_v29  ;;  %v1932_v33 = vpop.f32.mrb[30].mxu0  ;;  %2027 = vmatprep.mubr.bf16.mxu1 %v871_v30 }
 0x135   : > { %v1933_v34 = vpop.f32.mrb[31].mxu0 }
 0x136   : > { %v1934_v35 = vadd.f32 %v1933_v34, %v1932_v33  ;;  %v863_v38 = vmul.f32 %v1931_v32, %v842_v36 }
 0x138   : > { %v864_v39 = vmul.f32 %v1934_v35, %v847_v37 }
 0x13a   : > { %v872_v40 = vpack.c.bf16 %v864_v39, %v863_v38 }
 0x13c   : > { %2028 = vmatmul.mubr.bf16.gmra.mrb[12].mxu1 %v872_v40 }
 0x1df   : > { %v2017_v44 = vpop.f32.mrb[0].mxu1 }
 0x1e0   : > { %v2398_v45 = vadd.f32 %v2017_v44, %v1786_v43  ;;  %v1196_v46 = vpop.f32.mrb[1].mxu1 }
 0x1e1   : > { %v2018_v47 = vpop.f32.mrb[2].mxu1  ;;  %v2400_v48 = vadd.f32 %v1786_v43, %v1196_v46 }
 0x1e2   : > { %v1199_v49 = vpop.f32.mrb[3].mxu1  ;;  %v1287_v50 = vsel %vm1284_vm0, %v2398_v45, 0.0  ;;  %v2410_v53 = vadd.f32 %v2018_v47, %v1786_v43 }
 0x1e3   : > { %v2405_v51 = vadd.f32 %v1786_v43, %v1199_v49  ;;  %1305 = vadd.xlane.f32.xlu0 %v1287_v50  ;;  %v1285_v54 = vsel %vm1284_vm0, %v2400_v48, 0.0 }
 0x1e4   : > { %v1288_v55 = vsel %vm1284_vm0, %v2410_v53, 0.0 }
 0x1e5   : > { %v1286_v52 = vsel %vm1284_vm0, %v2405_v51, 0.0 }
 0x1e6   : > { %1303 = vadd.xlane.f32.xlu1 %v1286_v52 }
 0x1e7   : > { %1301 = vadd.xlane.f32.xlu0 %v1285_v54 }
 0x1eb   : > { %1307 = vadd.xlane.f32.xlu0 %v1288_v55 }
 0x1ef   : > { %v2021_v56 = vpop.f32.mrb[4].mxu1 }
 0x1f0   : > { %v2418_v57 = vadd.f32 %v2021_v56, %v1786_v43  ;;  %v1212_v58 = vpop.f32.mrb[5].mxu1 }
 0x1f1   : > { %v2022_v59 = vpop.f32.mrb[6].mxu1  ;;  %v2420_v60 = vadd.f32 %v1786_v43, %v1212_v58 }
 0x1f2   : > { %v2422_v61 = vadd.f32 %v2022_v59, %v1786_v43  ;;  %v1215_v62 = vpop.f32.mrb[7].mxu1  ;;  %v1291_v63 = vsel %vm1284_vm0, %v2418_v57, 0.0 }
 0x1f3   : > { %1313 = vadd.xlane.f32.xlu1 %v1291_v63  ;;  %v2427_v0 = vadd.f32 %v1786_v43, %v1215_v62  ;;  %v1289_v2 = vsel %vm1284_vm0, %v2420_v60, 0.0 }
 0x1f4   : > { %v1292_v1 = vsel %vm1284_vm0, %v2422_v61, 0.0 }
 0x1f5   : > { %1315 = vadd.xlane.f32.xlu0 %v1292_v1  ;;  %v1290_v3 = vsel %vm1284_vm0, %v2427_v0, 0.0 }
 0x1f7   : > { %1309 = vadd.xlane.f32.xlu1 %v1289_v2 }
 0x1f9   : > { %1311 = vadd.xlane.f32.xlu0 %v1290_v3 }
 0x1ff   : > { %v2025_v4 = vpop.f32.mrb[8].mxu1 }
 0x200   : > { %v2438_v5 = vadd.f32 %v2025_v4, %v1786_v43  ;;  %v1228_v6 = vpop.f32.mrb[9].mxu1 }
 0x201   : > { %v2026_v7 = vpop.f32.mrb[10].mxu1  ;;  %v2440_v8 = vadd.f32 %v1786_v43, %v1228_v6 }
 0x202   : > { %v2442_v9 = vadd.f32 %v2026_v7, %v1786_v43  ;;  %v1231_v10 = vpop.f32.mrb[11].mxu1  ;;  %v1295_v11 = vsel %vm1284_vm0, %v2438_v5, 0.0 }
 0x203   : > { %1321 = vadd.xlane.f32.xlu1 %v1295_v11  ;;  %v2447_v12 = vadd.f32 %v1786_v43, %v1231_v10  ;;  %v1293_v14 = vsel %vm1284_vm0, %v2440_v8, 0.0 }
 0x204   : > { %v1296_v13 = vsel %vm1284_vm0, %v2442_v9, 0.0 }
 0x205   : > { %1323 = vadd.xlane.f32.xlu0 %v1296_v13  ;;  %v1294_v15 = vsel %vm1284_vm0, %v2447_v12, 0.0 }
 0x207   : > { %1317 = vadd.xlane.f32.xlu1 %v1293_v14 }
 0x209   : > { %1319 = vadd.xlane.f32.xlu0 %v1294_v15 }
 0x20f   : > { %v2029_v16 = vpop.f32.mrb[12].mxu1 }
 0x210   : > { %v1244_v17 = vpop.f32.mrb[13].mxu1  ;;  %v2460_v21 = vadd.f32 %v2029_v16, %v1786_v43 }
 0x211   : > { %v2458_v18 = vadd.f32 %v1786_v43, %v1244_v17  ;;  %v2030_v19 = vpop.f32.mrb[14].mxu1 }
 0x212   : > { %v1247_v20 = vpop.f32.mrb[15].mxu1  ;;  %v2467_v24 = vadd.f32 %v2030_v19, %v1786_v43  ;;  %v1299_v26 = vsel %vm1284_vm0, %v2460_v21, 0.0 }
 0x213   : > { %v2462_v22 = vadd.f32 %v1786_v43, %v1247_v20  ;;  %v1297_v23 = vsel %vm1284_vm0, %v2458_v18, 0.0 }
 0x214   : > { %1325 = vadd.xlane.f32.xlu1 %v1297_v23  ;;  %v1300_v27 = vsel %vm1284_vm0, %v2467_v24, 0.0 }
 0x215   : > { %v1298_v25 = vsel %vm1284_vm0, %v2462_v22, 0.0 }
 0x216   : > { %1327 = vadd.xlane.f32.xlu0 %v1298_v25 }
 0x218   : > { %1329 = vadd.xlane.f32.xlu1 %v1299_v26 }
 0x21a   : > { %1331 = vadd.xlane.f32.xlu0 %v1300_v27 }
 0x270   : > { %v1306_v28 = vpop.xlane.xlu0 %1305 }
 0x271   : > { %v1335_v29 = vmul.f32 0.015625, %v1306_v28 }
 0x273   : > { %v1351_v30 = vsub.f32 %v2398_v45, %v1335_v29  ;;  %v1304_v31 = vpop.xlane.xlu1 %1303 }
 0x274   : > { %v1302_v32 = vpop.xlane.xlu0 %1301  ;;  %v1334_v36 = vmul.f32 0.015625, %v1304_v31 }
 0x275   : > { %v1333_v33 = vmul.f32 0.015625, %v1302_v32  ;;  %v2481_v34 = vsel %vm1284_vm0, %v1351_v30, 0.0 }
 0x276   : > { %v1383_v35 = vmul.f32 %v2481_v34, %v2481_v34  ;;  %v1350_v43 = vsub.f32 %v2405_v51, %v1334_v36 }
 0x277   : > { %v1349_v37 = vsub.f32 %v2400_v48, %v1333_v33 }
 0x278   : > { %v1308_v38 = vpop.xlane.xlu0 %1307  ;;  %1401 = vadd.xlane.f32.xlu1 %v1383_v35  ;;  %v2502_v47 = vsel %vm1284_vm0, %v1350_v43, 0.0 }
 0x279   : > { %v1336_v39 = vmul.f32 0.015625, %v1308_v38  ;;  %v2488_v40 = vsel %vm1284_vm0, %v1349_v37, 0.0  ;;  %v1382_v51 = vmul.f32 %v2502_v47, %v2502_v47 }
 0x27a   : > { %v1381_v41 = vmul.f32 %v2488_v40, %v2488_v40 }
 0x27b   : > { %v1352_v44 = vsub.f32 %v2410_v53, %v1336_v39 }
 0x27c   : > { %1397 = vadd.xlane.f32.xlu1 %v1381_v41 }
 0x27d   : > { %v2496_v45 = vsel %vm1284_vm0, %v1352_v44, 0.0 }
 0x27e   : > { %v1384_v46 = vmul.f32 %v2496_v45, %v2496_v45 }
 0x280   : > { %v1314_v48 = vpop.xlane.xlu1 %1313  ;;  %1403 = vadd.xlane.f32.xlu0 %v1384_v46 }
 0x281   : > { %v1339_v49 = vmul.f32 0.015625, %v1314_v48 }
 0x282   : > { %v1316_v50 = vpop.xlane.xlu0 %1315 }
 0x283   : > { %v1355_v52 = vsub.f32 %v2418_v57, %v1339_v49  ;;  %v1340_v53 = vmul.f32 0.015625, %v1316_v50 }
 0x284   : > { %v1310_v54 = vpop.xlane.xlu1 %1309  ;;  %1399 = vadd.xlane.f32.xlu0 %v1382_v51 }
 0x285   : > { %v1356_v55 = vsub.f32 %v2422_v61, %v1340_v53  ;;  %v1337_v56 = vmul.f32 0.015625, %v1310_v54  ;;  %v2510_v58 = vsel %vm1284_vm0, %v1355_v52, 0.0 }
 0x286   : > { %v1312_v59 = vpop.xlane.xlu0 %1311  ;;  %v1387_v62 = vmul.f32 %v2510_v58, %v2510_v58 }
 0x287   : > { %v1353_v63 = vsub.f32 %v2420_v60, %v1337_v56  ;;  %v1338_v1 = vmul.f32 0.015625, %v1312_v59  ;;  %v2517_v57 = vsel %vm1284_vm0, %v1356_v55, 0.0 }
 0x288   : > { %1409 = vadd.xlane.f32.xlu1 %v1387_v62  ;;  %v1388_v61 = vmul.f32 %v2517_v57, %v2517_v57 }
 0x289   : > { %v1354_v2 = vsub.f32 %v2427_v0, %v1338_v1  ;;  %v2524_v3 = vsel %vm1284_vm0, %v1353_v63, 0.0 }
 0x28a   : > { %1411 = vadd.xlane.f32.xlu0 %v1388_v61  ;;  %v1385_v4 = vmul.f32 %v2524_v3, %v2524_v3 }
 0x28b   : > { %v2530_v60 = vsel %vm1284_vm0, %v1354_v2, 0.0 }
 0x28c   : > { %1405 = vadd.xlane.f32.xlu1 %v1385_v4  ;;  %v1386_v6 = vmul.f32 %v2530_v60, %v2530_v60 }
 0x28e   : > { %1407 = vadd.xlane.f32.xlu0 %v1386_v6 }
 0x290   : > { %v1322_v7 = vpop.xlane.xlu1 %1321 }
 0x291   : > { %v1343_v10 = vmul.f32 0.015625, %v1322_v7 }
 0x292   : > { %v1324_v0 = vpop.xlane.xlu0 %1323 }
 0x293   : > { %v1359_v11 = vsub.f32 %v2438_v5, %v1343_v10  ;;  %v1344_v13 = vmul.f32 0.015625, %v1324_v0  ;;  %v2594_v0 = vld [vmem:[%s2679_s7] ss:$0 sm:$0xff] }
 0x294   : > { %v1318_v14 = vpop.xlane.xlu1 %1317 }
 0x295   : > { %v1360_v15 = vsub.f32 %v2442_v9, %v1344_v13  ;;  %v1341_v16 = vmul.f32 0.015625, %v1318_v14  ;;  %v2538_v17 = vsel %vm1284_vm0, %v1359_v11, 0.0 }
 0x296   : > { %v1320_v19 = vpop.xlane.xlu0 %1319  ;;  %v1391_v20 = vmul.f32 %v2538_v17, %v2538_v17 }
 0x297   : > { %v1357_v23 = vsub.f32 %v2440_v8, %v1341_v16  ;;  %v1342_v25 = vmul.f32 0.015625, %v1320_v19  ;;  %v2545_v26 = vsel %vm1284_vm0, %v1360_v15, 0.0 }
 0x298   : > { %1417 = vadd.xlane.f32.xlu1 %v1391_v20  ;;  %v1392_v5 = vmul.f32 %v2545_v26, %v2545_v26 }
 0x299   : > { %v1358_v9 = vsub.f32 %v2447_v12, %v1342_v25  ;;  %v2552_v27 = vsel %vm1284_vm0, %v1357_v23, 0.0 }
 0x29a   : > { %1419 = vadd.xlane.f32.xlu0 %v1392_v5  ;;  %v1389_v28 = vmul.f32 %v2552_v27, %v2552_v27 }
 0x29b   : > { %v2558_v8 = vsel %vm1284_vm0, %v1358_v9, 0.0 }
 0x29c   : > { %1413 = vadd.xlane.f32.xlu1 %v1389_v28  ;;  %v1390_v29 = vmul.f32 %v2558_v8, %v2558_v8 }
 0x29e   : > { %1415 = vadd.xlane.f32.xlu0 %v1390_v29 }
 0x2a1   : > { %v1326_v30 = vpop.xlane.xlu1 %1325 }
 0x2a2   : > { %v1345_v31 = vmul.f32 0.015625, %v1326_v30 }
 0x2a3   : > { %v1328_v12 = vpop.xlane.xlu0 %1327 }
 0x2a4   : > { %v1361_v32 = vsub.f32 %v2458_v18, %v1345_v31  ;;  %v1346_v33 = vmul.f32 0.015625, %v1328_v12 }
 0x2a5   : > { %v1330_v35 = vpop.xlane.xlu1 %1329 }
 0x2a6   : > { %v1362_v36 = vsub.f32 %v2462_v22, %v1346_v33  ;;  %v1347_v37 = vmul.f32 0.015625, %v1330_v35  ;;  %v2566_v38 = vsel %vm1284_vm0, %v1361_v32, 0.0 }
 0x2a7   : > { %v1332_v39 = vpop.xlane.xlu0 %1331  ;;  %v1393_v41 = vmul.f32 %v2566_v38, %v2566_v38 }
 0x2a8   : > { %v1363_v43 = vsub.f32 %v2460_v21, %v1347_v37  ;;  %v1348_v44 = vmul.f32 0.015625, %v1332_v39  ;;  %v2573_v46 = vsel %vm1284_vm0, %v1362_v36, 0.0 }
 0x2a9   : > { %1421 = vadd.xlane.f32.xlu1 %v1393_v41  ;;  %v1394_v18 = vmul.f32 %v2573_v46, %v2573_v46 }
 0x2aa   : > { %v1364_v22 = vsub.f32 %v2467_v24, %v1348_v44  ;;  %v2580_v48 = vsel %vm1284_vm0, %v1363_v43, 0.0 }
 0x2ab   : > { %1423 = vadd.xlane.f32.xlu0 %v1394_v18  ;;  %v1395_v49 = vmul.f32 %v2580_v48, %v2580_v48 }
 0x2ac   : > { %v2586_v21 = vsel %vm1284_vm0, %v1364_v22, 0.0 }
 0x2ad   : > { %1425 = vadd.xlane.f32.xlu1 %v1395_v49  ;;  %v1396_v50 = vmul.f32 %v2586_v21, %v2586_v21 }
 0x2af   : > { %1427 = vadd.xlane.f32.xlu0 %v1396_v50 }
 0x305   : > { %v1402_v51 = vpop.xlane.xlu1 %1401 }
 0x306   : > { %v1431_v52 = vmul.f32 0.015625, %v1402_v51 }
 0x308   : > { %v1447_v24 = vadd.f32 1e-05, %v1431_v52 }
 0x309   : > { %v1398_v53 = vpop.xlane.xlu1 %1397 }
 0x30a   : > { %2114 = vrsqrt.f32 %v1447_v24  ;;  %v1429_v54 = vmul.f32 0.015625, %v1398_v53 }
 0x30c   : > { %v1445_v55 = vadd.f32 1e-05, %v1429_v54 }
 0x30d   : > { %v1404_v56 = vpop.xlane.xlu0 %1403 }
 0x30e   : > { %2116 = vrsqrt.f32 %v1445_v55  ;;  %v1432_v59 = vmul.f32 0.015625, %v1404_v56 }
 0x310   : > { %v1448_v62 = vadd.f32 1e-05, %v1432_v59 }
 0x311   : > { %v1400_v63 = vpop.xlane.xlu0 %1399 }
 0x312   : > { %2118 = vrsqrt.f32 %v1448_v62  ;;  %v1430_v42 = vmul.f32 0.015625, %v1400_v63 }
 0x314   : > { %v2115_v1 = vpop.eup %2114  ;;  %v1446_v61 = vadd.f32 1e-05, %v1430_v42 }
 0x315   : > { %v1410_v2 = vpop.xlane.xlu1 %1409  ;;  %v1479_v6 = vmul.f32 %v2115_v1, %v2481_v34  ;;  %v2601_v34 = vld [vmem:[%s2680_s8] ss:$0 sm:$0xff] }
 0x316   : > { %2120 = vrsqrt.f32 %v1446_v61  ;;  %v1435_v4 = vmul.f32 0.015625, %v1410_v2 }
 0x317   : > { %v1412_v7 = vpop.xlane.xlu0 %1411  ;;  %v1502_v19 = vmul.f32 %v2594_v0, %v1479_v6 }
 0x318   : > { %v2117_v10 = vpop.eup %2116  ;;  %v1451_v11 = vadd.f32 1e-05, %v1435_v4  ;;  %v1436_v13 = vmul.f32 0.015625, %v1412_v7 }
 0x319   : > { %v1406_v14 = vpop.xlane.xlu1 %1405  ;;  %v1477_v20 = vmul.f32 %v2117_v10, %v2488_v40  ;;  %v1525_v30 = vadd.f32 %v2601_v34, %v1502_v19 }
 0x31a   : > { %2122 = vrsqrt.f32 %v1451_v11  ;;  %v1452_v15 = vadd.f32 1e-05, %v1436_v13  ;;  %v1433_v16 = vmul.f32 0.015625, %v1406_v14 }
 0x31b   : > { %v1408_v23 = vpop.xlane.xlu0 %1407  ;;  %v1500_v31 = vmul.f32 %v2594_v0, %v1477_v20  ;;  %v1541_v35 = vmax.f32 %v1525_v30, 0.0 }
 0x31c   : > { %v2119_v25 = vpop.eup %2118  ;;  %2124 = vrsqrt.f32 %v1452_v15  ;;  %v1449_v5 = vadd.f32 1e-05, %v1433_v16  ;;  %v1434_v9 = vmul.f32 0.015625, %v1408_v23 }
 0x31d   : > { %v1480_v28 = vmul.f32 %v2119_v25, %v2496_v45  ;;  %v1523_v36 = vadd.f32 %v2601_v34, %v1500_v31 }
 0x31e   : > { %2126 = vrsqrt.f32 %v1449_v5  ;;  %v1450_v29 = vadd.f32 1e-05, %v1434_v9 }
 0x31f   : > { %v1503_v40 = vmul.f32 %v2594_v0, %v1480_v28  ;;  %v1539_v49 = vmax.f32 %v1523_v36, 0.0 }
 0x320   : > { %v2121_v12 = vpop.eup %2120  ;;  %2128 = vrsqrt.f32 %v1450_v29 }
 0x321   : > { %v1526_v32 = vadd.f32 %v2601_v34, %v1503_v40  ;;  %v1478_v33 = vmul.f32 %v2121_v12, %v2502_v47 }
 0x323   : > { %v1542_v37 = vmax.f32 %v1526_v32, 0.0  ;;  %v1501_v45 = vmul.f32 %v2594_v0, %v1478_v33 }
 0x324   : > { %v2123_v39 = vpop.eup %2122 }
 0x325   : > { %v1832_v41 = vpack.c.bf16 %v1542_v37, %v1541_v35  ;;  %v1524_v43 = vadd.f32 %v2601_v34, %v1501_v45  ;;  %v1483_v44 = vmul.f32 %v2123_v39, %v2510_v58  ;;  %v1418_v47 = vpop.xlane.xlu1 %1417 }
 0x326   : > { %v2125_v18 = vpop.eup %2124  ;;  %v1439_v22 = vmul.f32 0.015625, %v1418_v47 }
 0x327   : > { %1864 = vst [vmem:[%s2616_s21 + $0x8] sm:$0xff] %v1832_v41   ;;  %v1540_v50 = vmax.f32 %v1524_v43, 0.0  ;;  %v1506_v51 = vmul.f32 %v2594_v0, %v1483_v44  ;;  %v1484_v52 = vmul.f32 %v2125_v18, %v2517_v57  ;;  %v1420_v24 = vpop.xlane.xlu0 %1419 }
 0x328   : > { %v2127_v53 = vpop.eup %2126  ;;  %v1455_v54 = vadd.f32 1e-05, %v1439_v22  ;;  %v1440_v55 = vmul.f32 0.015625, %v1420_v24 }
 0x329   : > { %v1827_v56 = vpack.c.bf16 %v1540_v50, %v1539_v49  ;;  %v1529_v59 = vadd.f32 %v2601_v34, %v1506_v51  ;;  %v1507_v58 = vmul.f32 %v2594_v0, %v1484_v52  ;;  %v1481_v62 = vmul.f32 %v2127_v53, %v2524_v3  ;;  %v1414_v63 = vpop.xlane.xlu1 %1413 }
 0x32a   : > { %v2129_v42 = vpop.eup %2128  ;;  %2130 = vrsqrt.f32 %v1455_v54  ;;  %v1456_v1 = vadd.f32 1e-05, %v1440_v55  ;;  %v1437_v61 = vmul.f32 0.015625, %v1414_v63 }
 0x32b   : > { %1828 = vst [vmem:[%s2616_s21] sm:$0xff] %v1827_v56   ;;  %v1530_v2 = vadd.f32 %v2601_v34, %v1507_v58  ;;  %v1504_v57 = vmul.f32 %v2594_v0, %v1481_v62  ;;  %v1482_v4 = vmul.f32 %v2129_v42, %v2530_v60  ;;  %v1416_v6 = vpop.xlane.xlu0 %1415  ;;  %v1545_v11 = vmax.f32 %v1529_v59, 0.0 }
 0x32c   : > { %2132 = vrsqrt.f32 %v1456_v1  ;;  %v1453_v7 = vadd.f32 1e-05, %v1437_v61  ;;  %v1438_v10 = vmul.f32 0.015625, %v1416_v6 }
 0x32d   : > { %v1546_v3 = vmax.f32 %v1530_v2, 0.0  ;;  %v1527_v13 = vadd.f32 %v2601_v34, %v1504_v57  ;;  %v1505_v14 = vmul.f32 %v2594_v0, %v1482_v4 }
 0x32e   : > { %2134 = vrsqrt.f32 %v1453_v7  ;;  %v1454_v15 = vadd.f32 1e-05, %v1438_v10 }
 0x32f   : > { %v1842_v16 = vpack.c.bf16 %v1546_v3, %v1545_v11  ;;  %v1528_v19 = vadd.f32 %v2601_v34, %v1505_v14  ;;  %v1543_v20 = vmax.f32 %v1527_v13, 0.0 }
 0x330   : > { %2136 = vrsqrt.f32 %v1454_v15 }
 0x331   : > { %1866 = vst [vmem:[%s2616_s21 + $0x18] sm:$0xff] %v1842_v16   ;;  %v1544_v60 = vmax.f32 %v1528_v19, 0.0 }
 0x333   : > { %v1837_v23 = vpack.c.bf16 %v1544_v60, %v1543_v20 }
 0x334   : > { %v2131_v25 = vpop.eup %2130 }
 0x335   : > { %1865 = vst [vmem:[%s2616_s21 + $0x10] sm:$0xff] %v1837_v23   ;;  %v1487_v5 = vmul.f32 %v2131_v25, %v2538_v17 }
 0x336   : > { %v2133_v9 = vpop.eup %2132  ;;  %v1422_v28 = vpop.xlane.xlu1 %1421 }
 0x337   : > { %v1510_v29 = vmul.f32 %v2594_v0, %v1487_v5  ;;  %v1488_v30 = vmul.f32 %v2133_v9, %v2545_v26  ;;  %v1441_v31 = vmul.f32 0.015625, %v1422_v28 }
 0x338   : > { %v2135_v40 = vpop.eup %2134  ;;  %v1424_v12 = vpop.xlane.xlu0 %1423 }
 0x339   : > { %v1533_v32 = vadd.f32 %v2601_v34, %v1510_v29  ;;  %v1511_v33 = vmul.f32 %v2594_v0, %v1488_v30  ;;  %v1485_v35 = vmul.f32 %v2135_v40, %v2552_v27  ;;  %v1457_v36 = vadd.f32 1e-05, %v1441_v31 }
 0x33a   : > { %v2137_v37 = vpop.eup %2136  ;;  %v1442_v45 = vmul.f32 0.015625, %v1424_v12  ;;  %v1426_v39 = vpop.xlane.xlu1 %1425 }
 0x33b   : > { %v1534_v17 = vadd.f32 %v2601_v34, %v1511_v33  ;;  %v1508_v41 = vmul.f32 %v2594_v0, %v1485_v35  ;;  %v1486_v43 = vmul.f32 %v2137_v37, %v2558_v8  ;;  %v1549_v26 = vmax.f32 %v1533_v32, 0.0 }
 0x33c   : > { %2138 = vrsqrt.f32 %v1457_v36  ;;  %v1458_v44 = vadd.f32 1e-05, %v1442_v45  ;;  %v1443_v47 = vmul.f32 0.015625, %v1426_v39  ;;  %v1428_v18 = vpop.xlane.xlu0 %1427 }
 0x33d   : > { %v1550_v22 = vmax.f32 %v1534_v17, 0.0  ;;  %v1531_v27 = vadd.f32 %v2601_v34, %v1508_v41  ;;  %v1509_v49 = vmul.f32 %v2594_v0, %v1486_v43  ;;  %v1444_v50 = vmul.f32 0.015625, %v1428_v18 }
 0x33e   : > { %2140 = vrsqrt.f32 %v1458_v44  ;;  %v1459_v51 = vadd.f32 1e-05, %v1443_v47 }
 0x33f   : > { %v1852_v52 = vpack.c.bf16 %v1550_v22, %v1549_v26  ;;  %v1532_v24 = vadd.f32 %v2601_v34, %v1509_v49  ;;  %v1460_v53 = vadd.f32 1e-05, %v1444_v50  ;;  %v1547_v8 = vmax.f32 %v1531_v27, 0.0 }
 0x340   : > { %2142 = vrsqrt.f32 %v1459_v51 }
 0x341   : > { %1868 = vst [vmem:[%s2616_s21 + $0x28] sm:$0xff] %v1852_v52   ;;  %v1548_v54 = vmax.f32 %v1532_v24, 0.0  ;;  %2144 = vrsqrt.f32 %v1460_v53 }
 0x343   : > { %v1847_v55 = vpack.c.bf16 %v1548_v54, %v1547_v8 }
 0x345   : > { %1867 = vst [vmem:[%s2616_s21 + $0x20] sm:$0xff] %v1847_v55  }
 0x346   : > { %v2139_v56 = vpop.eup %2138 }
 0x347   : > { %v1489_v59 = vmul.f32 %v2139_v56, %v2566_v38 }
 0x348   : > { %v2141_v58 = vpop.eup %2140 }
 0x349   : > { %v1512_v62 = vmul.f32 %v2594_v0, %v1489_v59  ;;  %v1490_v63 = vmul.f32 %v2141_v58, %v2573_v46 }
 0x34a   : > { %v2143_v42 = vpop.eup %2142 }
 0x34b   : > { %v2145_v1 = vpop.eup %2144  ;;  %v1535_v61 = vadd.f32 %v2601_v34, %v1512_v62  ;;  %v1513_v2 = vmul.f32 %v2594_v0, %v1490_v63  ;;  %v1491_v57 = vmul.f32 %v2143_v42, %v2580_v48 }
 0x34c   : > { %v1492_v4 = vmul.f32 %v2145_v1, %v2586_v21 }
 0x34d   : > { %v1536_v6 = vadd.f32 %v2601_v34, %v1513_v2  ;;  %v1514_v38 = vmul.f32 %v2594_v0, %v1491_v57  ;;  %v1551_v10 = vmax.f32 %v1535_v61, 0.0 }
 0x34e   : > { %v1515_v7 = vmul.f32 %v2594_v0, %v1492_v4 }
 0x34f   : > { %v1552_v46 = vmax.f32 %v1536_v6, 0.0  ;;  %v1537_v11 = vadd.f32 %v2601_v34, %v1514_v38 }
 0x350   : > { %v1538_v3 = vadd.f32 %v2601_v34, %v1515_v7 }
 0x351   : > { %v1857_v13 = vpack.c.bf16 %v1552_v46, %v1551_v10  ;;  %v1553_v14 = vmax.f32 %v1537_v11, 0.0 }
 0x352   : > { %v1554_v15 = vmax.f32 %v1538_v3, 0.0 }
 0x353   : > { %1869 = vst [vmem:[%s2616_s21 + $0x30] sm:$0xff] %v1857_v13  }
 0x354   : > { %v1862_v16 = vpack.c.bf16 %v1554_v15, %v1553_v14 }
 0x356   : > { %1870 = vst [vmem:[%s2616_s21 + $0x38] sm:$0xff] %v1862_v16  }
 0x357 PF: > { %s19_s11 = sadd.s32 1, %s2168_s11   ;;  %s2682_s30 = smov %s2164_s10 }
 0x358   : > { %p16_p6 = scmp.ge.s32.totalorder %s19_s11, 4   ;;  %s2683_s10 = smov %s2685_s12 }
 0x35a   :  { %18 = sbr.rel (!%p16_p6) target bundleno = 2 (0x2), region = 101 }

// kernel: gcn_sage_residual.3
= control target key start
LH: loop header
LB: loop body
LE: loop exit
PB: predicated region body
PF: predicated region fallthrough
CT: control target
= control target key end

     0   :  { %s2178_s13 = smov 0   ;;  %s2180_s14 = smov 0   ;;  %s2659_s0 = inlined_call_operand.vmem [shape: s8[256,256], index: 0, kind: input, shape index: {}]   ;;  %s2660_s1 = inlined_call_operand.vmem [shape: bf16[256,128], index: 1, kind: input, shape index: {}, may-alias: {1,2}]   ;;  %s2661_s2 = inlined_call_operand.vmem [shape: bf16[256,128], index: 2, kind: input, shape index: {}, may-alias: {1,2}]   ;;  %s2662_s3 = inlined_call_operand.vmem [shape: f32[256,1], index: 3, kind: input, shape index: {}]   ;;  %s2663_s4 = inlined_call_operand.vmem [shape: f32[256,128], index: 4, kind: input, shape index: {}]   ;;  %s2664_s5 = inlined_call_operand.vmem [shape: bf16[128,128], index: 5, kind: input, shape index: {}]   ;;  %s2665_s6 = inlined_call_operand.vmem [shape: bf16[128,128], index: 6, kind: input, shape index: {}]   ;;  %s2666_s7 = inlined_call_operand.vmem [shape: f32[1,128], index: 7, kind: input, shape index: {}]   ;;  %s2667_s8 = inlined_call_operand.vmem [shape: f32[1,128], index: 8, kind: input, shape index: {}]   ;;  %s2668_s9 = inlined_call_operand.vmem [shape: f32[1,128], index: 9, kind: input, shape index: {}]   ;;  %s2669_s10 = inlined_call_operand.vmem [shape: f32[256,128], index: 10, kind: output, shape index: {}]  }
   0x1   :  { %s2182_s15 = smov 0  }
   0x2 LB: > { %s32_s16 = sadd.s32 1, %s2116_s14  ;;  %p1765_p0 = scmp.ge.s32.totalorder %s2120_s15, 1  ;;  %s2120_s15 = sphi %s2182_s15, %s20_s15   ;;  %s2116_s14 = sphi %s2180_s14, %s2671_s14   ;;  %s2112_s13 = sphi %s2178_s13, %s2670_s13  }
   0x3   : > { %p34_p1 = scmp.ge.s32.totalorder %s32_s16, 2  ;;  %p366_p2 = scmp.lt.s32.totalorder %s2120_s15, 3 }
   0x5   : > { %s2673_s16 = smov (%p34_p1, %s32_s16), 0  ;;  %p367_p3 = pnand %p1765_p0, %p366_p2 }
   0x6   : > { %v2026_v0 = vld [vmem:[%s2660_s1 + $0x40] sm:$0xff] (!%p367_p3)   ;;  %s1766_s19 = sshll.u32 (!%p367_p3), %s2112_s13, 2  ;;  %v2028_v2 = vld [vmem:[%s2660_s1 + $0x48] sm:$0xff] (!%p367_p3)   ;;  %v2122_v4 = vmov (!%p367_p3), 0   ;;  %v2030_v5 = vld [vmem:[%s2660_s1 + $0x50] sm:$0xff] (!%p367_p3)   ;;  %s1769_s28 = sshll.u32 (!%p367_p3), %s2112_s13, 4 }
   0x7   : > { %370 = sbr.rel (%p367_p3) target bundleno = 856 (0x358), region = 60  ;;  %v2027_v1 = vld [vmem:[%s2660_s1] sm:$0xff] (!%p367_p3)   ;;  %p426_p4 = scmp.lt.s32.totalorder (!%p367_p3), %s1766_s19, 7  ;;  %1823 = vmatprep.subr.bf16.mxu0 (!%p367_p3), %v2026_v0  ;;  %v2029_v3 = vld [vmem:[%s2660_s1 + $0x8] sm:$0xff] (!%p367_p3)   ;;  %2024 = vset.pattern.permute.xlu0 (!%p367_p3), %v2122_v4  ;;  %v2031_v6 = vld [vmem:[%s2660_s1 + $0x10] sm:$0xff] (!%p367_p3)  }
   0x8   : > { %1824 = vmatpush3.bf16.msra.mxu0 (!%p367_p3), %v2027_v1  ;;  %2025 = vset.pattern.permute.xlu1 (!%p367_p3), %v2122_v4  ;;  %p437_p5 = scmp.lt.s32.totalorder (!%p367_p3), %s1769_s28, 31  ;;  %v2032_v7 = vld [vmem:[%s2660_s1 + $0x58] sm:$0xff] (!%p367_p3)   ;;  %v2034_v9 = vld [vmem:[%s2660_s1 + $0x60] sm:$0xff] (!%p367_p3)   ;;  %v2036_v11 = vld [vmem:[%s2660_s1 + $0x68] sm:$0xff] (!%p367_p3)  }
   0x9   : > { %1825 = vmatprep.subr.bf16.mxu0 (!%p367_p3), %v2028_v2  ;;  %v2033_v8 = vld [vmem:[%s2660_s1 + $0x18] sm:$0xff] (!%p367_p3)   ;;  %v2035_v10 = vld [vmem:[%s2660_s1 + $0x20] sm:$0xff] (!%p367_p3)   ;;  %v2037_v15 = vld [vmem:[%s2660_s1 + $0x28] sm:$0xff] (!%p367_p3)  }
   0xa   : > { %v2038_v17 = vld [vmem:[%s2660_s1 + $0x70] sm:$0xff] (!%p367_p3)   ;;  %v2040_v21 = vld [vmem:[%s2660_s1 + $0x78] sm:$0xff] (!%p367_p3)   ;;  %v2042_v23 = vld [vmem:[%s2665_s6] sm:$0xff] (!%p367_p3)  }
   0xb   : > { %v2039_v20 = vld [vmem:[%s2660_s1 + $0x30] sm:$0xff] (!%p367_p3)   ;;  %v2041_v24 = vld [vmem:[%s2660_s1 + $0x38] sm:$0xff] (!%p367_p3)   ;;  %v2043_v25 = vld [vmem:[%s2665_s6 + $0x8] sm:$0xff] (!%p367_p3)   ;;  %1919 = vmatprep.subr.bf16.mxu1 (!%p367_p3), %v2042_v23 }
   0xc   : > { %1826 = vmatpush3.bf16.msra.mxu0 (!%p367_p3), %v2029_v3  ;;  %1920 = vmatpush3.bf16.msra.mxu1 (!%p367_p3), %v2042_v23  ;;  %v2044_v28 = vld [vmem:[%s2665_s6 + $0x10] sm:$0xff] (!%p367_p3)   ;;  %v2045_v33 = vld [vmem:[%s2665_s6 + $0x18] sm:$0xff] (!%p367_p3)   ;;  %v2046_v38 = vld [vmem:[%s2665_s6 + $0x20] sm:$0xff] (!%p367_p3)  }
   0xd   : > { %1827 = vmatprep.subr.bf16.mxu0 (!%p367_p3), %v2030_v5  ;;  %1921 = vmatprep.subr.bf16.mxu1 (!%p367_p3), %v2043_v25  ;;  %v2047_v44 = vld [vmem:[%s2665_s6 + $0x28] sm:$0xff] (!%p367_p3)   ;;  %v2048_v47 = vld [vmem:[%s2665_s6 + $0x30] sm:$0xff] (!%p367_p3)   ;;  %v2049_v52 = vld [vmem:[%s2665_s6 + $0x38] sm:$0xff] (!%p367_p3)  }
   0xe   : > { %s2675_s19 = smov (!%p426_p4, %s1766_s19), 7  ;;  %s2677_s28 = smov (!%p437_p5, %s1769_s28), 31  ;;  %v2052_v54 = vld [vmem:[%s2664_s5] sm:$0xff]   ;;  %v2053_v58 = vld [vmem:[%s2664_s5 + $0x8] sm:$0xff]   ;;  %v2056_v61 = vld [vmem:[%s2664_s5 + $0x10] sm:$0xff]  }
   0xf   : > { %s1822_s17 = sshll.u32 %s2675_s19, 4  ;;  %s2230_s22 = sshll.u32 %s2677_s28, 3  ;;  %v2057_v1 = vld [vmem:[%s2664_s5 + $0x18] sm:$0xff]  }
  0x10   : > { %1828 = vmatpush3.bf16.msra.mxu0 %v2031_v6  ;;  %s2235_s25 = scalar_lea.vmem %s2659_s0, %s1822_s17  ;;  %s2244_s30 = scalar_lea.vmem %s2662_s3, %s2230_s22  ;;  %1922 = vmatpush3.bf16.msra.mxu1 %v2043_v25 }
  0x11   : > { %1829 = vmatprep.subr.bf16.mxu0 %v2032_v7  ;;  %v535_v12 = vld [vmem:[%s2235_s25 + $0x8] sm:$0xff]  ;;  %v802_v14 = vld [vmem:[%s2244_s30] sm:$0xff]  ;;  %v804_v16 = vld [vmem:[%s2244_s30 + $0x10] sm:$0xff]  ;;  %s1770_s18 = sshll.u32 %s2677_s28, 2  ;;  %1923 = vmatprep.subr.bf16.mxu1 %v2044_v28  ;;  %s2563_s29 = scalar_lea.vmem %s2663_s4, %s2230_s22 }
  0x12   : > { %v543_v13 = vunpack.c.l.s8.bf16 %v535_v12  ;;  %820 = vperm.xlu0 %2024, %v802_v14   ;;  %830 = vperm.xlu1 %2025, %v804_v16   ;;  %v803_v18 = vld [vmem:[%s2244_s30 + $0x8] sm:$0xff]  ;;  %v805_v19 = vld [vmem:[%s2244_s30 + $0x18] sm:$0xff]  ;;  %v806_v22 = vld [vmem:[%s2244_s30 + $0x20] sm:$0xff]  ;;  %s2286_s24 = scalar_lea.vmem %s2661_s2, %s1770_s18  ;;  %v545_v32 = vunpack.c.h.s8.bf16 %v535_v12 }
  0x13   : > { %v807_v26 = vld [vmem:[%s2244_s30 + $0x28] sm:$0xff]  ;;  %v534_v27 = vld [vmem:[%s2235_s25] sm:$0xff]  ;;  %v808_v29 = vld [vmem:[%s2244_s30 + $0x30] sm:$0xff] }
  0x14   : > { %1830 = vmatpush3.bf16.msra.mxu0 %v2033_v8  ;;  %686 = vmatprep.mubr.bf16.mxu0 %v543_v13  ;;  %v542_v30 = vunpack.c.l.s8.bf16 %v534_v27  ;;  %v809_v31 = vld [vmem:[%s2244_s30 + $0x38] sm:$0xff]  ;;  %v2050_v34 = vld [vmem:[%s2286_s24] sm:$0xff]   ;;  %v811_v36 = vld [vmem:[%s2244_s30 + $0x48] sm:$0xff]  ;;  %v544_v40 = vunpack.c.h.s8.bf16 %v534_v27 }
  0x15   : > { %1831 = vmatprep.subr.bf16.mxu0 %v2034_v9  ;;  %v810_v35 = vld [vmem:[%s2244_s30 + $0x40] sm:$0xff]  ;;  %1935 = vmatprep.mubr.bf16.mxu1 %v2050_v34  ;;  %v537_v37 = vld [vmem:[%s2235_s25 + $0x18] sm:$0xff]  ;;  %v812_v39 = vld [vmem:[%s2244_s30 + $0x50] sm:$0xff] }
  0x16   : > { %825 = vperm.xlu0 %2024, %v803_v18   ;;  %835 = vperm.xlu1 %2025, %v805_v19   ;;  %v813_v41 = vld [vmem:[%s2244_s30 + $0x58] sm:$0xff]  ;;  %v547_v42 = vunpack.c.l.s8.bf16 %v537_v37  ;;  %v814_v43 = vld [vmem:[%s2244_s30 + $0x60] sm:$0xff]  ;;  %v815_v45 = vld [vmem:[%s2244_s30 + $0x68] sm:$0xff]  ;;  %v549_v51 = vunpack.c.h.s8.bf16 %v537_v37 }
  0x17   : > { %1924 = vmatpush3.bf16.msra.mxu1 %v2044_v28  ;;  %v536_v46 = vld [vmem:[%s2235_s25 + $0x10] sm:$0xff]  ;;  %v817_v50 = vld [vmem:[%s2244_s30 + $0x78] sm:$0xff]  ;;  %v539_v53 = vld [vmem:[%s2235_s25 + $0x28] sm:$0xff] }
  0x18   : > { %1832 = vmatpush3.bf16.msra.mxu0 %v2035_v10  ;;  %1925 = vmatprep.subr.bf16.mxu1 %v2045_v33  ;;  %v816_v48 = vld [vmem:[%s2244_s30 + $0x70] sm:$0xff]  ;;  %v546_v49 = vunpack.c.l.s8.bf16 %v536_v46  ;;  %v548_v55 = vunpack.c.h.s8.bf16 %v536_v46  ;;  %v2051_v56 = vld [vmem:[%s2286_s24 + $0x8] sm:$0xff]   ;;  %v551_v57 = vunpack.c.l.s8.bf16 %v539_v53  ;;  %v538_v60 = vld [vmem:[%s2235_s25 + $0x20] sm:$0xff]  ;;  %v553_v0 = vunpack.c.h.s8.bf16 %v539_v53 }
  0x19   : > { %1833 = vmatprep.subr.bf16.mxu0 %v2036_v11  ;;  %v2054_v59 = vld [vmem:[%s2286_s24 + $0x10] sm:$0xff]   ;;  %v550_v62 = vunpack.c.l.s8.bf16 %v538_v60  ;;  %v2055_v63 = vld [vmem:[%s2286_s24 + $0x18] sm:$0xff]   ;;  %v552_v3 = vunpack.c.h.s8.bf16 %v538_v60  ;;  %v2058_v9 = vld [vmem:[%s2286_s24 + $0x20] sm:$0xff]  }
  0x1a   : > { %840 = vperm.xlu0 %2024, %v806_v22   ;;  %845 = vperm.xlu1 %2025, %v807_v26   ;;  %v541_v2 = vld [vmem:[%s2235_s25 + $0x38] sm:$0xff]  ;;  %v540_v5 = vld [vmem:[%s2235_s25 + $0x30] sm:$0xff]  ;;  %v2059_v10 = vld [vmem:[%s2286_s24 + $0x28] sm:$0xff]   ;;  %s2574_s25 = scalar_lea.vmem %s2669_s10, %s2230_s22 }
  0x1b   : > { %1926 = vmatpush3.bf16.msra.mxu1 %v2045_v33  ;;  %v555_v4 = vunpack.c.l.s8.bf16 %v541_v2  ;;  %v554_v6 = vunpack.c.l.s8.bf16 %v540_v5  ;;  %v557_v7 = vunpack.c.h.s8.bf16 %v541_v2  ;;  %v556_v8 = vunpack.c.h.s8.bf16 %v540_v5  ;;  %v2060_v11 = vld [vmem:[%s2664_s5 + $0x20] sm:$0xff]   ;;  %v2061_v12 = vld [vmem:[%s2664_s5 + $0x28] sm:$0xff]   ;;  %v2062_v13 = vld [vmem:[%s2286_s24 + $0x30] sm:$0xff]  }
  0x1c   : > { %1834 = vmatpush3.bf16.msra.mxu0 %v2037_v15  ;;  %1927 = vmatprep.subr.bf16.mxu1 %v2046_v38  ;;  %v2063_v14 = vld [vmem:[%s2286_s24 + $0x38] sm:$0xff]   ;;  %v2064_v15 = vld [vmem:[%s2664_s5 + $0x30] sm:$0xff]  }
  0x1d   : > { %1835 = vmatprep.subr.bf16.mxu0 %v2038_v17  ;;  %v2065_v16 = vld [vmem:[%s2664_s5 + $0x38] sm:$0xff]  }
  0x1e   : > { %850 = vperm.xlu0 %2024, %v808_v29   ;;  %855 = vperm.xlu1 %2025, %v809_v31  }
  0x1f   : > { %1928 = vmatpush3.bf16.msra.mxu1 %v2046_v38 }
  0x20   : > { %1836 = vmatpush3.bf16.msra.mxu0 %v2039_v20  ;;  %1929 = vmatprep.subr.bf16.mxu1 %v2047_v44 }
  0x21   : > { %1837 = vmatprep.subr.bf16.mxu0 %v2040_v21 }
  0x22   : > { %860 = vperm.xlu0 %2024, %v810_v35   ;;  %865 = vperm.xlu1 %2025, %v811_v36  }
  0x23   : > { %1930 = vmatpush3.bf16.msra.mxu1 %v2047_v44 }
  0x24   : > { %1838 = vmatpush3.bf16.msra.mxu0 %v2041_v24  ;;  %1931 = vmatprep.subr.bf16.mxu1 %v2048_v47 }
  0x26   : > { %870 = vperm.xlu0 %2024, %v812_v39   ;;  %875 = vperm.xlu1 %2025, %v813_v41  }
  0x27   : > { %687 = vmatmul.mubr.bf16.vlgmr.msra.gmra.mrb[0].mxu0 %v542_v30  ;;  %1932 = vmatpush3.bf16.msra.mxu1 %v2048_v47 }
  0x28   : > { %694 = vmatprep.mubr.bf16.mxu0 %v545_v32  ;;  %1933 = vmatprep.subr.bf16.mxu1 %v2049_v52 }
  0x2a   : > { %880 = vperm.xlu0 %2024, %v814_v43   ;;  %885 = vperm.xlu1 %2025, %v815_v45  }
  0x2b   : > { %1934 = vmatpush3.bf16.msra.mxu1 %v2049_v52 }
  0x2c   : > { %1951 = vmatprep.subr.bf16.mxu1 %v2052_v54 }
  0x2e   : > { %890 = vperm.xlu0 %2024, %v816_v48   ;;  %895 = vperm.xlu1 %2025, %v817_v50  }
  0x2f   : > { %695 = vmatmul.mubr.bf16.gmra.mrb[4].mxu0 %v544_v40  ;;  %1936 = vmatmul.mubr.bf16.vlgmr.msra.gmra.mrb[0].mxu1 %v2051_v56 }
  0x30   : > { %702 = vmatprep.mubr.bf16.mxu0 %v547_v42  ;;  %1952 = vmatpush3.bf16.msra.mxu1 %v2052_v54 }
  0x31   : > { %1953 = vmatprep.subr.bf16.mxu1 %v2053_v58  ;;  %1939 = vmatprep.mubr.bf16.mxu1 %v2054_v59 }
  0x34   : > { %1954 = vmatpush3.bf16.msra.mxu1 %v2053_v58 }
  0x35   : > { %1955 = vmatprep.subr.bf16.mxu1 %v2056_v61 }
  0x37   : > { %703 = vmatmul.mubr.bf16.gmra.mrb[8].mxu0 %v546_v49  ;;  %1940 = vmatmul.mubr.bf16.gmra.mrb[4].mxu1 %v2055_v63 }
  0x38   : > { %710 = vmatprep.mubr.bf16.mxu0 %v549_v51  ;;  %1956 = vmatpush3.bf16.msra.mxu1 %v2056_v61 }
  0x39   : > { %1957 = vmatprep.subr.bf16.mxu1 %v2057_v1  ;;  %1943 = vmatprep.mubr.bf16.mxu1 %v2058_v9 }
  0x3c   : > { %1958 = vmatpush3.bf16.msra.mxu1 %v2057_v1 }
  0x3d   : > { %1959 = vmatprep.subr.bf16.mxu1 %v2060_v11 }
  0x3f   : > { %711 = vmatmul.mubr.bf16.gmra.mrb[12].mxu0 %v548_v55  ;;  %1944 = vmatmul.mubr.bf16.gmra.mrb[8].mxu1 %v2059_v10 }
  0x40   : > { %718 = vmatprep.mubr.bf16.mxu0 %v551_v57  ;;  %1960 = vmatpush3.bf16.msra.mxu1 %v2060_v11 }
  0x41   : > { %1961 = vmatprep.subr.bf16.mxu1 %v2061_v12  ;;  %1947 = vmatprep.mubr.bf16.mxu1 %v2062_v13 }
  0x44   : > { %1962 = vmatpush3.bf16.msra.mxu1 %v2061_v12 }
  0x45   : > { %1963 = vmatprep.subr.bf16.mxu1 %v2064_v15 }
  0x47   : > { %719 = vmatmul.mubr.bf16.gmra.mrb[16].mxu0 %v550_v62  ;;  %1948 = vmatmul.mubr.bf16.gmra.mrb[12].mxu1 %v2063_v14 }
  0x48   : > { %726 = vmatprep.mubr.bf16.mxu0 %v553_v0  ;;  %1964 = vmatpush3.bf16.msra.mxu1 %v2064_v15 }
  0x49   : > { %1965 = vmatprep.subr.bf16.mxu1 %v2065_v16 }
  0x4c   : > { %1966 = vmatpush3.bf16.msra.mxu1 %v2065_v16 }
  0x4f   : > { %727 = vmatmul.mubr.bf16.gmra.mrb[20].mxu0 %v552_v3 }
  0x50   : > { %734 = vmatprep.mubr.bf16.mxu0 %v555_v4 }
  0x57   : > { %735 = vmatmul.mubr.bf16.gmra.mrb[24].mxu0 %v554_v6 }
  0x58   : > { %742 = vmatprep.mubr.bf16.mxu0 %v557_v7 }
  0x5f   : > { %743 = vmatmul.mubr.bf16.gmra.mrb[28].mxu0 %v556_v8 }
  0x91   : > { %v821_v17 = vpop.permute.xlu0 %820  ;;  %v831_v27 = vpop.permute.xlu1 %830 }
  0x95   : > { %v826_v24 = vpop.permute.xlu0 %825  ;;  %v836_v35 = vpop.permute.xlu1 %835 }
  0x99   : > { %v841_v45 = vpop.permute.xlu0 %840  ;;  %v846_v46 = vpop.permute.xlu1 %845 }
  0x9d   : > { %v851_v56 = vpop.permute.xlu0 %850  ;;  %v856_v57 = vpop.permute.xlu1 %855 }
  0xa1   : > { %v861_v3 = vpop.permute.xlu0 %860  ;;  %v866_v4 = vpop.permute.xlu1 %865 }
  0xa5   : > { %v871_v14 = vpop.permute.xlu0 %870  ;;  %v876_v15 = vpop.permute.xlu1 %875 }
  0xfa   : > { %v1839_v18 = vpop.f32.mrb[0].mxu0 }
  0xfb   : > { %v1840_v19 = vpop.f32.mrb[1].mxu0 }
  0xfc   : > { %v1841_v20 = vadd.f32 %v1840_v19, %v1839_v18  ;;  %v1842_v21 = vpop.f32.mrb[2].mxu0 }
  0xfd   : > { %v1843_v22 = vpop.f32.mrb[3].mxu0 }
  0xfe   : > { %v1844_v23 = vadd.f32 %v1843_v22, %v1842_v21  ;;  %v898_v25 = vmul.f32 %v1841_v20, %v821_v17 }
 0x100   : > { %v899_v26 = vmul.f32 %v1844_v23, %v826_v24 }
 0x102   : > { %v1845_v28 = vpop.f32.mrb[4].mxu0  ;;  %v914_v29 = vpack.c.bf16 %v899_v26, %v898_v25  ;;  %v881_v25 = vpop.permute.xlu0 %880 }
 0x103   : > { %v1846_v30 = vpop.f32.mrb[5].mxu0  ;;  %v886_v26 = vpop.permute.xlu1 %885 }
 0x104   : > { %v1847_v31 = vadd.f32 %v1846_v30, %v1845_v28  ;;  %v1848_v32 = vpop.f32.mrb[6].mxu0  ;;  %1967 = vmatprep.mubr.bf16.mxu1 %v914_v29 }
 0x105   : > { %v1849_v33 = vpop.f32.mrb[7].mxu0 }
 0x106   : > { %v1850_v34 = vadd.f32 %v1849_v33, %v1848_v32  ;;  %v900_v36 = vmul.f32 %v1847_v31, %v831_v27 }
 0x108   : > { %v901_v37 = vmul.f32 %v1850_v34, %v836_v35 }
 0x10a   : > { %v915_v38 = vpack.c.bf16 %v901_v37, %v900_v36  ;;  %v1851_v39 = vpop.f32.mrb[8].mxu0  ;;  %v891_v36 = vpop.permute.xlu0 %890 }
 0x10b   : > { %v1852_v40 = vpop.f32.mrb[9].mxu0  ;;  %v896_v37 = vpop.permute.xlu1 %895 }
 0x10c   : > { %v1853_v41 = vadd.f32 %v1852_v40, %v1851_v39  ;;  %v1854_v42 = vpop.f32.mrb[10].mxu0  ;;  %1968 = vmatmul.mubr.bf16.vlgmr.msra.gmra.mrb[0].mxu1 %v915_v38 }
 0x10d   : > { %v1855_v43 = vpop.f32.mrb[11].mxu0 }
 0x10e   : > { %v1856_v44 = vadd.f32 %v1855_v43, %v1854_v42  ;;  %v902_v47 = vmul.f32 %v1853_v41, %v841_v45  ;;  %v1331_v41 = vlaneseq  ;;  %v1817_v43 = vld [vmem:[%s2666_s7] ss:$0 sm:$0xff] }
 0x110   : > { %v903_v48 = vmul.f32 %v1856_v44, %v846_v46  ;;  %v2350_v42 = vand.u32 127, %v1331_v41 }
 0x112   : > { %v1857_v49 = vpop.f32.mrb[12].mxu0  ;;  %v916_v50 = vpack.c.bf16 %v903_v48, %v902_v47  ;;  %vm1333_vm0 = vcmp.lt.s32.totalorder %v2350_v42, 32 }
 0x113   : > { %v1858_v51 = vpop.f32.mrb[13].mxu0 }
 0x114   : > { %v1859_v52 = vadd.f32 %v1858_v51, %v1857_v49  ;;  %v1860_v53 = vpop.f32.mrb[14].mxu0  ;;  %1971 = vmatprep.mubr.bf16.mxu1 %v916_v50 }
 0x115   : > { %v1861_v54 = vpop.f32.mrb[15].mxu0 }
 0x116   : > { %v1862_v55 = vadd.f32 %v1861_v54, %v1860_v53  ;;  %v904_v58 = vmul.f32 %v1859_v52, %v851_v56 }
 0x118   : > { %v905_v59 = vmul.f32 %v1862_v55, %v856_v57 }
 0x11a   : > { %v1863_v60 = vpop.f32.mrb[16].mxu0  ;;  %v917_v61 = vpack.c.bf16 %v905_v59, %v904_v58 }
 0x11b   : > { %v1864_v62 = vpop.f32.mrb[17].mxu0 }
 0x11c   : > { %v1865_v63 = vadd.f32 %v1864_v62, %v1863_v60  ;;  %v1866_v0 = vpop.f32.mrb[18].mxu0  ;;  %1972 = vmatmul.mubr.bf16.gmra.mrb[4].mxu1 %v917_v61 }
 0x11d   : > { %v1867_v1 = vpop.f32.mrb[19].mxu0 }
 0x11e   : > { %v1868_v2 = vadd.f32 %v1867_v1, %v1866_v0  ;;  %v906_v5 = vmul.f32 %v1865_v63, %v861_v3 }
 0x120   : > { %v907_v6 = vmul.f32 %v1868_v2, %v866_v4 }
 0x122   : > { %v1869_v7 = vpop.f32.mrb[20].mxu0  ;;  %v918_v8 = vpack.c.bf16 %v907_v6, %v906_v5 }
 0x123   : > { %v1870_v9 = vpop.f32.mrb[21].mxu0 }
 0x124   : > { %v1871_v10 = vadd.f32 %v1870_v9, %v1869_v7  ;;  %v1872_v11 = vpop.f32.mrb[22].mxu0  ;;  %1975 = vmatprep.mubr.bf16.mxu1 %v918_v8 }
 0x125   : > { %v1873_v12 = vpop.f32.mrb[23].mxu0 }
 0x126   : > { %v1874_v13 = vadd.f32 %v1873_v12, %v1872_v11  ;;  %v908_v16 = vmul.f32 %v1871_v10, %v871_v14 }
 0x128   : > { %v909_v17 = vmul.f32 %v1874_v13, %v876_v15 }
 0x12a   : > { %v1875_v18 = vpop.f32.mrb[24].mxu0  ;;  %v919_v19 = vpack.c.bf16 %v909_v17, %v908_v16 }
 0x12b   : > { %v1876_v20 = vpop.f32.mrb[25].mxu0 }
 0x12c   : > { %v1877_v21 = vadd.f32 %v1876_v20, %v1875_v18  ;;  %v1878_v22 = vpop.f32.mrb[26].mxu0  ;;  %1976 = vmatmul.mubr.bf16.gmra.mrb[8].mxu1 %v919_v19 }
 0x12d   : > { %v1879_v23 = vpop.f32.mrb[27].mxu0 }
 0x12e   : > { %v1880_v24 = vadd.f32 %v1879_v23, %v1878_v22  ;;  %v910_v27 = vmul.f32 %v1877_v21, %v881_v25 }
 0x130   : > { %v911_v28 = vmul.f32 %v1880_v24, %v886_v26 }
 0x132   : > { %v1881_v29 = vpop.f32.mrb[28].mxu0  ;;  %v920_v30 = vpack.c.bf16 %v911_v28, %v910_v27 }
 0x133   : > { %v1882_v31 = vpop.f32.mrb[29].mxu0 }
 0x134   : > { %v1883_v32 = vadd.f32 %v1882_v31, %v1881_v29  ;;  %v1884_v33 = vpop.f32.mrb[30].mxu0  ;;  %1979 = vmatprep.mubr.bf16.mxu1 %v920_v30 }
 0x135   : > { %v1885_v34 = vpop.f32.mrb[31].mxu0 }
 0x136   : > { %v1886_v35 = vadd.f32 %v1885_v34, %v1884_v33  ;;  %v912_v38 = vmul.f32 %v1883_v32, %v891_v36 }
 0x138   : > { %v913_v39 = vmul.f32 %v1886_v35, %v896_v37 }
 0x13a   : > { %v921_v40 = vpack.c.bf16 %v913_v39, %v912_v38 }
 0x13c   : > { %1980 = vmatmul.mubr.bf16.gmra.mrb[12].mxu1 %v921_v40 }
 0x1df   : > { %v1969_v44 = vpop.f32.mrb[0].mxu1 }
 0x1e0   : > { %v2356_v45 = vadd.f32 %v1969_v44, %v1817_v43  ;;  %v1245_v46 = vpop.f32.mrb[1].mxu1 }
 0x1e1   : > { %v1970_v47 = vpop.f32.mrb[2].mxu1  ;;  %v2358_v48 = vadd.f32 %v1817_v43, %v1245_v46 }
 0x1e2   : > { %v1248_v49 = vpop.f32.mrb[3].mxu1  ;;  %v1336_v50 = vsel %vm1333_vm0, %v2356_v45, 0.0  ;;  %v2368_v53 = vadd.f32 %v1970_v47, %v1817_v43 }
 0x1e3   : > { %v2363_v51 = vadd.f32 %v1817_v43, %v1248_v49  ;;  %1354 = vadd.xlane.f32.xlu0 %v1336_v50  ;;  %v1334_v54 = vsel %vm1333_vm0, %v2358_v48, 0.0 }
 0x1e4   : > { %v1337_v55 = vsel %vm1333_vm0, %v2368_v53, 0.0 }
 0x1e5   : > { %v1335_v52 = vsel %vm1333_vm0, %v2363_v51, 0.0 }
 0x1e6   : > { %1352 = vadd.xlane.f32.xlu1 %v1335_v52 }
 0x1e7   : > { %1350 = vadd.xlane.f32.xlu0 %v1334_v54 }
 0x1eb   : > { %1356 = vadd.xlane.f32.xlu0 %v1337_v55 }
 0x1ef   : > { %v1973_v56 = vpop.f32.mrb[4].mxu1 }
 0x1f0   : > { %v2376_v57 = vadd.f32 %v1973_v56, %v1817_v43  ;;  %v1261_v58 = vpop.f32.mrb[5].mxu1 }
 0x1f1   : > { %v1974_v59 = vpop.f32.mrb[6].mxu1  ;;  %v2378_v60 = vadd.f32 %v1817_v43, %v1261_v58 }
 0x1f2   : > { %v2380_v61 = vadd.f32 %v1974_v59, %v1817_v43  ;;  %v1264_v62 = vpop.f32.mrb[7].mxu1  ;;  %v1340_v63 = vsel %vm1333_vm0, %v2376_v57, 0.0 }
 0x1f3   : > { %1362 = vadd.xlane.f32.xlu1 %v1340_v63  ;;  %v2385_v0 = vadd.f32 %v1817_v43, %v1264_v62  ;;  %v1338_v2 = vsel %vm1333_vm0, %v2378_v60, 0.0 }
 0x1f4   : > { %v1341_v1 = vsel %vm1333_vm0, %v2380_v61, 0.0 }
 0x1f5   : > { %1364 = vadd.xlane.f32.xlu0 %v1341_v1  ;;  %v1339_v3 = vsel %vm1333_vm0, %v2385_v0, 0.0 }
 0x1f7   : > { %1358 = vadd.xlane.f32.xlu1 %v1338_v2 }
 0x1f9   : > { %1360 = vadd.xlane.f32.xlu0 %v1339_v3 }
 0x1ff   : > { %v1977_v4 = vpop.f32.mrb[8].mxu1 }
 0x200   : > { %v2396_v5 = vadd.f32 %v1977_v4, %v1817_v43  ;;  %v1277_v6 = vpop.f32.mrb[9].mxu1 }
 0x201   : > { %v1978_v7 = vpop.f32.mrb[10].mxu1  ;;  %v2398_v8 = vadd.f32 %v1817_v43, %v1277_v6 }
 0x202   : > { %v2400_v9 = vadd.f32 %v1978_v7, %v1817_v43  ;;  %v1280_v10 = vpop.f32.mrb[11].mxu1  ;;  %v1344_v11 = vsel %vm1333_vm0, %v2396_v5, 0.0 }
 0x203   : > { %1370 = vadd.xlane.f32.xlu1 %v1344_v11  ;;  %v2405_v12 = vadd.f32 %v1817_v43, %v1280_v10  ;;  %v1342_v14 = vsel %vm1333_vm0, %v2398_v8, 0.0 }
 0x204   : > { %v1345_v13 = vsel %vm1333_vm0, %v2400_v9, 0.0 }
 0x205   : > { %1372 = vadd.xlane.f32.xlu0 %v1345_v13  ;;  %v1343_v15 = vsel %vm1333_vm0, %v2405_v12, 0.0 }
 0x207   : > { %1366 = vadd.xlane.f32.xlu1 %v1342_v14 }
 0x209   : > { %1368 = vadd.xlane.f32.xlu0 %v1343_v15 }
 0x20f   : > { %v1981_v16 = vpop.f32.mrb[12].mxu1 }
 0x210   : > { %v1293_v17 = vpop.f32.mrb[13].mxu1  ;;  %v2418_v21 = vadd.f32 %v1981_v16, %v1817_v43 }
 0x211   : > { %v2416_v18 = vadd.f32 %v1817_v43, %v1293_v17  ;;  %v1982_v19 = vpop.f32.mrb[14].mxu1 }
 0x212   : > { %v1296_v20 = vpop.f32.mrb[15].mxu1  ;;  %v2425_v24 = vadd.f32 %v1982_v19, %v1817_v43  ;;  %v1348_v26 = vsel %vm1333_vm0, %v2418_v21, 0.0 }
 0x213   : > { %v2420_v22 = vadd.f32 %v1817_v43, %v1296_v20  ;;  %v1346_v23 = vsel %vm1333_vm0, %v2416_v18, 0.0 }
 0x214   : > { %1374 = vadd.xlane.f32.xlu1 %v1346_v23  ;;  %v1349_v27 = vsel %vm1333_vm0, %v2425_v24, 0.0 }
 0x215   : > { %v1347_v25 = vsel %vm1333_vm0, %v2420_v22, 0.0 }
 0x216   : > { %1376 = vadd.xlane.f32.xlu0 %v1347_v25 }
 0x218   : > { %1378 = vadd.xlane.f32.xlu1 %v1348_v26 }
 0x21a   : > { %1380 = vadd.xlane.f32.xlu0 %v1349_v27 }
 0x270   : > { %v1355_v28 = vpop.xlane.xlu0 %1354 }
 0x271   : > { %v1384_v29 = vmul.f32 0.03125, %v1355_v28 }
 0x273   : > { %v1400_v30 = vsub.f32 %v2356_v45, %v1384_v29  ;;  %v1353_v31 = vpop.xlane.xlu1 %1352 }
 0x274   : > { %v1351_v32 = vpop.xlane.xlu0 %1350  ;;  %v1383_v36 = vmul.f32 0.03125, %v1353_v31 }
 0x275   : > { %v1382_v33 = vmul.f32 0.03125, %v1351_v32  ;;  %v2439_v34 = vsel %vm1333_vm0, %v1400_v30, 0.0 }
 0x276   : > { %v1432_v35 = vmul.f32 %v2439_v34, %v2439_v34  ;;  %v1399_v43 = vsub.f32 %v2363_v51, %v1383_v36 }
 0x277   : > { %v1398_v37 = vsub.f32 %v2358_v48, %v1382_v33 }
 0x278   : > { %v1357_v38 = vpop.xlane.xlu0 %1356  ;;  %1450 = vadd.xlane.f32.xlu1 %v1432_v35  ;;  %v2460_v47 = vsel %vm1333_vm0, %v1399_v43, 0.0 }
 0x279   : > { %v1385_v39 = vmul.f32 0.03125, %v1357_v38  ;;  %v2446_v40 = vsel %vm1333_vm0, %v1398_v37, 0.0  ;;  %v1431_v51 = vmul.f32 %v2460_v47, %v2460_v47 }
 0x27a   : > { %v1430_v41 = vmul.f32 %v2446_v40, %v2446_v40 }
 0x27b   : > { %v1401_v44 = vsub.f32 %v2368_v53, %v1385_v39 }
 0x27c   : > { %1446 = vadd.xlane.f32.xlu1 %v1430_v41 }
 0x27d   : > { %v2454_v45 = vsel %vm1333_vm0, %v1401_v44, 0.0 }
 0x27e   : > { %v1433_v46 = vmul.f32 %v2454_v45, %v2454_v45 }
 0x280   : > { %v1363_v48 = vpop.xlane.xlu1 %1362  ;;  %1452 = vadd.xlane.f32.xlu0 %v1433_v46 }
 0x281   : > { %v1388_v49 = vmul.f32 0.03125, %v1363_v48 }
 0x282   : > { %v1365_v50 = vpop.xlane.xlu0 %1364 }
 0x283   : > { %v1404_v52 = vsub.f32 %v2376_v57, %v1388_v49  ;;  %v1389_v53 = vmul.f32 0.03125, %v1365_v50 }
 0x284   : > { %v1359_v54 = vpop.xlane.xlu1 %1358  ;;  %1448 = vadd.xlane.f32.xlu0 %v1431_v51 }
 0x285   : > { %v1405_v55 = vsub.f32 %v2380_v61, %v1389_v53  ;;  %v1386_v56 = vmul.f32 0.03125, %v1359_v54  ;;  %v2468_v58 = vsel %vm1333_vm0, %v1404_v52, 0.0 }
 0x286   : > { %v1361_v59 = vpop.xlane.xlu0 %1360  ;;  %v1436_v62 = vmul.f32 %v2468_v58, %v2468_v58 }
 0x287   : > { %v1402_v63 = vsub.f32 %v2378_v60, %v1386_v56  ;;  %v1387_v1 = vmul.f32 0.03125, %v1361_v59  ;;  %v2475_v57 = vsel %vm1333_vm0, %v1405_v55, 0.0 }
 0x288   : > { %1458 = vadd.xlane.f32.xlu1 %v1436_v62  ;;  %v1437_v61 = vmul.f32 %v2475_v57, %v2475_v57 }
 0x289   : > { %v1403_v2 = vsub.f32 %v2385_v0, %v1387_v1  ;;  %v2482_v3 = vsel %vm1333_vm0, %v1402_v63, 0.0 }
 0x28a   : > { %1460 = vadd.xlane.f32.xlu0 %v1437_v61  ;;  %v1434_v4 = vmul.f32 %v2482_v3, %v2482_v3  ;;  %v2551_v61 = vld [vmem:[%s2667_s8] ss:$0 sm:$0xff] }
 0x28b   : > { %v2488_v60 = vsel %vm1333_vm0, %v1403_v2, 0.0 }
 0x28c   : > { %1454 = vadd.xlane.f32.xlu1 %v1434_v4  ;;  %v1435_v6 = vmul.f32 %v2488_v60, %v2488_v60 }
 0x28e   : > { %1456 = vadd.xlane.f32.xlu0 %v1435_v6 }
 0x290   : > { %v1371_v7 = vpop.xlane.xlu1 %1370 }
 0x291   : > { %v1392_v10 = vmul.f32 0.03125, %v1371_v7  ;;  %v2557_v7 = vld [vmem:[%s2668_s9] ss:$0 sm:$0xff] }
 0x292   : > { %v1373_v0 = vpop.xlane.xlu0 %1372 }
 0x293   : > { %v1408_v11 = vsub.f32 %v2396_v5, %v1392_v10  ;;  %v1393_v13 = vmul.f32 0.03125, %v1373_v0 }
 0x294   : > { %v1367_v14 = vpop.xlane.xlu1 %1366 }
 0x295   : > { %v1409_v15 = vsub.f32 %v2400_v9, %v1393_v13  ;;  %v1390_v16 = vmul.f32 0.03125, %v1367_v14  ;;  %v2496_v17 = vsel %vm1333_vm0, %v1408_v11, 0.0 }
 0x296   : > { %v1369_v19 = vpop.xlane.xlu0 %1368  ;;  %v1440_v20 = vmul.f32 %v2496_v17, %v2496_v17 }
 0x297   : > { %v1406_v23 = vsub.f32 %v2398_v8, %v1390_v16  ;;  %v1391_v25 = vmul.f32 0.03125, %v1369_v19  ;;  %v2503_v26 = vsel %vm1333_vm0, %v1409_v15, 0.0 }
 0x298   : > { %1466 = vadd.xlane.f32.xlu1 %v1440_v20  ;;  %v1441_v5 = vmul.f32 %v2503_v26, %v2503_v26  ;;  %v1606_v20 = vld [vmem:[%s2563_s29 + $0x10] sm:$0xff] }
 0x299   : > { %v1407_v9 = vsub.f32 %v2405_v12, %v1391_v25  ;;  %v2510_v27 = vsel %vm1333_vm0, %v1406_v23, 0.0 }
 0x29a   : > { %1468 = vadd.xlane.f32.xlu0 %v1441_v5  ;;  %v1438_v28 = vmul.f32 %v2510_v27, %v2510_v27 }
 0x29b   : > { %v2516_v8 = vsel %vm1333_vm0, %v1407_v9, 0.0 }
 0x29c   : > { %1462 = vadd.xlane.f32.xlu1 %v1438_v28  ;;  %v1439_v29 = vmul.f32 %v2516_v8, %v2516_v8 }
 0x29e   : > { %1464 = vadd.xlane.f32.xlu0 %v1439_v29 }
 0x2a1   : > { %v1375_v30 = vpop.xlane.xlu1 %1374 }
 0x2a2   : > { %v1394_v31 = vmul.f32 0.03125, %v1375_v30 }
 0x2a3   : > { %v1377_v12 = vpop.xlane.xlu0 %1376 }
 0x2a4   : > { %v1410_v32 = vsub.f32 %v2416_v18, %v1394_v31  ;;  %v1395_v33 = vmul.f32 0.03125, %v1377_v12 }
 0x2a5   : > { %v1379_v35 = vpop.xlane.xlu1 %1378 }
 0x2a6   : > { %v1411_v36 = vsub.f32 %v2420_v22, %v1395_v33  ;;  %v1396_v37 = vmul.f32 0.03125, %v1379_v35  ;;  %v2524_v38 = vsel %vm1333_vm0, %v1410_v32, 0.0  ;;  %v1604_v33 = vld [vmem:[%s2563_s29] sm:$0xff] }
 0x2a7   : > { %v1381_v39 = vpop.xlane.xlu0 %1380  ;;  %v1442_v41 = vmul.f32 %v2524_v38, %v2524_v38 }
 0x2a8   : > { %v1412_v43 = vsub.f32 %v2418_v21, %v1396_v37  ;;  %v1397_v44 = vmul.f32 0.03125, %v1381_v39  ;;  %v2531_v46 = vsel %vm1333_vm0, %v1411_v36, 0.0 }
 0x2a9   : > { %1470 = vadd.xlane.f32.xlu1 %v1442_v41  ;;  %v1443_v18 = vmul.f32 %v2531_v46, %v2531_v46 }
 0x2aa   : > { %v1413_v22 = vsub.f32 %v2425_v24, %v1397_v44  ;;  %v2538_v48 = vsel %vm1333_vm0, %v1412_v43, 0.0 }
 0x2ab   : > { %1472 = vadd.xlane.f32.xlu0 %v1443_v18  ;;  %v1444_v49 = vmul.f32 %v2538_v48, %v2538_v48  ;;  %v1607_v18 = vld [vmem:[%s2563_s29 + $0x18] sm:$0xff] }
 0x2ac   : > { %v2544_v21 = vsel %vm1333_vm0, %v1413_v22, 0.0 }
 0x2ad   : > { %1474 = vadd.xlane.f32.xlu1 %v1444_v49  ;;  %v1445_v50 = vmul.f32 %v2544_v21, %v2544_v21 }
 0x2af   : > { %1476 = vadd.xlane.f32.xlu0 %v1445_v50 }
 0x305   : > { %v1451_v51 = vpop.xlane.xlu1 %1450 }
 0x306   : > { %v1480_v52 = vmul.f32 0.03125, %v1451_v51 }
 0x308   : > { %v1496_v24 = vadd.f32 1e-05, %v1480_v52 }
 0x309   : > { %v1447_v53 = vpop.xlane.xlu1 %1446 }
 0x30a   : > { %2066 = vrsqrt.f32 %v1496_v24  ;;  %v1478_v54 = vmul.f32 0.03125, %v1447_v53 }
 0x30c   : > { %v1494_v55 = vadd.f32 1e-05, %v1478_v54  ;;  %v1605_v54 = vld [vmem:[%s2563_s29 + $0x8] sm:$0xff] }
 0x30d   : > { %v1453_v56 = vpop.xlane.xlu0 %1452 }
 0x30e   : > { %2068 = vrsqrt.f32 %v1494_v55  ;;  %v1481_v59 = vmul.f32 0.03125, %v1453_v56 }
 0x310   : > { %v1497_v62 = vadd.f32 1e-05, %v1481_v59 }
 0x311   : > { %v1449_v42 = vpop.xlane.xlu0 %1448 }
 0x312   : > { %2070 = vrsqrt.f32 %v1497_v62  ;;  %v1479_v63 = vmul.f32 0.03125, %v1449_v42 }
 0x314   : > { %v2067_v1 = vpop.eup %2066  ;;  %v1495_v2 = vadd.f32 1e-05, %v1479_v63 }
 0x315   : > { %v1528_v4 = vmul.f32 %v2067_v1, %v2439_v34  ;;  %v1459_v6 = vpop.xlane.xlu1 %1458 }
 0x316   : > { %2072 = vrsqrt.f32 %v1495_v2  ;;  %v1484_v10 = vmul.f32 0.03125, %v1459_v6 }
 0x317   : > { %v1551_v0 = vmul.f32 %v2551_v61, %v1528_v4  ;;  %v1461_v11 = vpop.xlane.xlu0 %1460 }
 0x318   : > { %v2069_v13 = vpop.eup %2068  ;;  %v1500_v34 = vadd.f32 1e-05, %v1484_v10  ;;  %v1485_v14 = vmul.f32 0.03125, %v1461_v11  ;;  %v1610_v11 = vld [vmem:[%s2563_s29 + $0x30] sm:$0xff] }
 0x319   : > { %v1574_v15 = vadd.f32 %v2557_v7, %v1551_v0  ;;  %v1526_v16 = vmul.f32 %v2069_v13, %v2446_v40  ;;  %v1455_v19 = vpop.xlane.xlu1 %1454 }
 0x31a   : > { %2074 = vrsqrt.f32 %v1500_v34  ;;  %v1501_v23 = vadd.f32 1e-05, %v1485_v14  ;;  %v1482_v25 = vmul.f32 0.03125, %v1455_v19 }
 0x31b   : > { %v1590_v5 = vmax.f32 %v1574_v15, 0.0  ;;  %v1549_v9 = vmul.f32 %v2551_v61, %v1526_v16  ;;  %v1457_v28 = vpop.xlane.xlu0 %1456 }
 0x31c   : > { %v2071_v29 = vpop.eup %2070  ;;  %2076 = vrsqrt.f32 %v1501_v23  ;;  %v1498_v30 = vadd.f32 1e-05, %v1482_v25  ;;  %v1483_v40 = vmul.f32 0.03125, %v1457_v28 }
 0x31d   : > { %v1622_v31 = vadd.f32 %v1606_v20, %v1590_v5  ;;  %v1572_v12 = vadd.f32 %v2557_v7, %v1549_v9  ;;  %v1529_v32 = vmul.f32 %v2071_v29, %v2454_v45  ;;  %v1611_v20 = vld [vmem:[%s2563_s29 + $0x38] sm:$0xff]  ;;  %v1608_v29 = vld [vmem:[%s2563_s29 + $0x20] sm:$0xff] }
 0x31e   : > { %2078 = vrsqrt.f32 %v1498_v30  ;;  %v1499_v35 = vadd.f32 1e-05, %v1483_v40 }
 0x31f   : > { %1638 = vst [vmem:[%s2574_s25 + $0x10] sm:$0xff] %v1622_v31  ;;  %v1588_v36 = vmax.f32 %v1572_v12, 0.0  ;;  %v1552_v37 = vmul.f32 %v2551_v61, %v1529_v32  ;;  %v1609_v12 = vld [vmem:[%s2563_s29 + $0x28] sm:$0xff] }
 0x320   : > { %v2073_v39 = vpop.eup %2072  ;;  %2080 = vrsqrt.f32 %v1499_v35 }
 0x321   : > { %v1620_v41 = vadd.f32 %v1604_v33, %v1588_v36  ;;  %v1575_v43 = vadd.f32 %v2557_v7, %v1552_v37  ;;  %v1527_v44 = vmul.f32 %v2073_v39, %v2460_v47 }
 0x323   : > { %1636 = vst [vmem:[%s2574_s25] sm:$0xff] %v1620_v41  ;;  %v1591_v22 = vmax.f32 %v1575_v43, 0.0  ;;  %v1550_v45 = vmul.f32 %v2551_v61, %v1527_v44 }
 0x324   : > { %v2075_v49 = vpop.eup %2074 }
 0x325   : > { %v1623_v50 = vadd.f32 %v1607_v18, %v1591_v22  ;;  %v1573_v51 = vadd.f32 %v2557_v7, %v1550_v45  ;;  %v1532_v52 = vmul.f32 %v2075_v49, %v2468_v58  ;;  %v1467_v24 = vpop.xlane.xlu1 %1466 }
 0x326   : > { %v2077_v53 = vpop.eup %2076  ;;  %v1488_v55 = vmul.f32 0.03125, %v1467_v24 }
 0x327   : > { %1639 = vst [vmem:[%s2574_s25 + $0x18] sm:$0xff] %v1623_v50  ;;  %v1589_v56 = vmax.f32 %v1573_v51, 0.0  ;;  %v1555_v47 = vmul.f32 %v2551_v61, %v1532_v52  ;;  %v1533_v59 = vmul.f32 %v2077_v53, %v2475_v57  ;;  %v1469_v62 = vpop.xlane.xlu0 %1468  ;;  %v1614_v53 = vld [vmem:[%s2563_s29 + $0x50] sm:$0xff] }
 0x328   : > { %v2079_v42 = vpop.eup %2078  ;;  %v1504_v63 = vadd.f32 1e-05, %v1488_v55  ;;  %v1489_v1 = vmul.f32 0.03125, %v1469_v62 }
 0x329   : > { %v1621_v2 = vadd.f32 %v1605_v54, %v1589_v56  ;;  %v1578_v58 = vadd.f32 %v2557_v7, %v1555_v47  ;;  %v1556_v4 = vmul.f32 %v2551_v61, %v1533_v59  ;;  %v1530_v6 = vmul.f32 %v2079_v42, %v2482_v3  ;;  %v1463_v10 = vpop.xlane.xlu1 %1462  ;;  %v1615_v59 = vld [vmem:[%s2563_s29 + $0x58] sm:$0xff] }
 0x32a   : > { %v2081_v0 = vpop.eup %2080  ;;  %2082 = vrsqrt.f32 %v1504_v63  ;;  %v1505_v13 = vadd.f32 1e-05, %v1489_v1  ;;  %v1486_v34 = vmul.f32 0.03125, %v1463_v10 }
 0x32b   : > { %1637 = vst [vmem:[%s2574_s25 + $0x8] sm:$0xff] %v1621_v2  ;;  %v1594_v57 = vmax.f32 %v1578_v58, 0.0  ;;  %v1579_v14 = vadd.f32 %v2557_v7, %v1556_v4  ;;  %v1553_v15 = vmul.f32 %v2551_v61, %v1530_v6  ;;  %v1531_v16 = vmul.f32 %v2081_v0, %v2488_v60  ;;  %v1465_v19 = vpop.xlane.xlu0 %1464  ;;  %v1612_v4 = vld [vmem:[%s2563_s29 + $0x40] sm:$0xff] }
 0x32c   : > { %2084 = vrsqrt.f32 %v1505_v13  ;;  %v1502_v3 = vadd.f32 1e-05, %v1486_v34  ;;  %v1487_v23 = vmul.f32 0.03125, %v1465_v19  ;;  %v1613_v13 = vld [vmem:[%s2563_s29 + $0x48] sm:$0xff] }
 0x32d   : > { %v1626_v25 = vadd.f32 %v1610_v11, %v1594_v57  ;;  %v1595_v5 = vmax.f32 %v1579_v14, 0.0  ;;  %v1576_v9 = vadd.f32 %v2557_v7, %v1553_v15  ;;  %v1554_v28 = vmul.f32 %v2551_v61, %v1531_v16 }
 0x32e   : > { %2086 = vrsqrt.f32 %v1502_v3  ;;  %v1503_v30 = vadd.f32 1e-05, %v1487_v23 }
 0x32f   : > { %1642 = vst [vmem:[%s2574_s25 + $0x30] sm:$0xff] %v1626_v25  ;;  %v1627_v60 = vadd.f32 %v1611_v20, %v1595_v5  ;;  %v1592_v40 = vmax.f32 %v1576_v9, 0.0  ;;  %v1577_v31 = vadd.f32 %v2557_v7, %v1554_v28 }
 0x330   : > { %2088 = vrsqrt.f32 %v1503_v30  ;;  %v1616_v30 = vld [vmem:[%s2563_s29 + $0x60] sm:$0xff] }
 0x331   : > { %1643 = vst [vmem:[%s2574_s25 + $0x38] sm:$0xff] %v1627_v60  ;;  %v1624_v32 = vadd.f32 %v1608_v29, %v1592_v40  ;;  %v1593_v33 = vmax.f32 %v1577_v31, 0.0  ;;  %v1617_v31 = vld [vmem:[%s2563_s29 + $0x68] sm:$0xff] }
 0x333   : > { %1640 = vst [vmem:[%s2574_s25 + $0x20] sm:$0xff] %v1624_v32  ;;  %v1625_v35 = vadd.f32 %v1609_v12, %v1593_v33 }
 0x334   : > { %v2083_v36 = vpop.eup %2082 }
 0x335   : > { %1641 = vst [vmem:[%s2574_s25 + $0x28] sm:$0xff] %v1625_v35  ;;  %v1536_v37 = vmul.f32 %v2083_v36, %v2496_v17  ;;  %v1618_v35 = vld [vmem:[%s2563_s29 + $0x70] sm:$0xff] }
 0x336   : > { %v2085_v39 = vpop.eup %2084  ;;  %v1471_v41 = vpop.xlane.xlu1 %1470 }
 0x337   : > { %v1559_v43 = vmul.f32 %v2551_v61, %v1536_v37  ;;  %v1537_v44 = vmul.f32 %v2085_v39, %v2503_v26  ;;  %v1490_v18 = vmul.f32 0.03125, %v1471_v41  ;;  %v1619_v41 = vld [vmem:[%s2563_s29 + $0x78] sm:$0xff] }
 0x338   : > { %v2087_v22 = vpop.eup %2086  ;;  %v1473_v45 = vpop.xlane.xlu0 %1472 }
 0x339   : > { %v1582_v49 = vadd.f32 %v2557_v7, %v1559_v43  ;;  %v1560_v50 = vmul.f32 %v2551_v61, %v1537_v44  ;;  %v1534_v51 = vmul.f32 %v2087_v22, %v2510_v27  ;;  %v1506_v52 = vadd.f32 1e-05, %v1490_v18 }
 0x33a   : > { %v2089_v24 = vpop.eup %2088  ;;  %v1491_v17 = vmul.f32 0.03125, %v1473_v45  ;;  %v1475_v54 = vpop.xlane.xlu1 %1474 }
 0x33b   : > { %v1598_v55 = vmax.f32 %v1582_v49, 0.0  ;;  %v1583_v56 = vadd.f32 %v2557_v7, %v1560_v50  ;;  %v1557_v26 = vmul.f32 %v2551_v61, %v1534_v51  ;;  %v1535_v47 = vmul.f32 %v2089_v24, %v2516_v8 }
 0x33c   : > { %2090 = vrsqrt.f32 %v1506_v52  ;;  %v1507_v62 = vadd.f32 1e-05, %v1491_v17  ;;  %v1492_v42 = vmul.f32 0.03125, %v1475_v54  ;;  %v1477_v27 = vpop.xlane.xlu0 %1476 }
 0x33d   : > { %v1630_v63 = vadd.f32 %v1614_v53, %v1598_v55  ;;  %v1599_v1 = vmax.f32 %v1583_v56, 0.0  ;;  %v1580_v2 = vadd.f32 %v2557_v7, %v1557_v26  ;;  %v1558_v58 = vmul.f32 %v2551_v61, %v1535_v47 }
 0x33e   : > { %2092 = vrsqrt.f32 %v1507_v62  ;;  %v1508_v6 = vadd.f32 1e-05, %v1492_v42  ;;  %v1493_v10 = vmul.f32 0.03125, %v1477_v27 }
 0x33f   : > { %1646 = vst [vmem:[%s2574_s25 + $0x50] sm:$0xff] %v1630_v63  ;;  %v1631_v8 = vadd.f32 %v1615_v59, %v1599_v1  ;;  %v1596_v0 = vmax.f32 %v1580_v2, 0.0  ;;  %v1581_v11 = vadd.f32 %v2557_v7, %v1558_v58 }
 0x340   : > { %2094 = vrsqrt.f32 %v1508_v6  ;;  %v1509_v34 = vadd.f32 1e-05, %v1493_v10 }
 0x341   : > { %1647 = vst [vmem:[%s2574_s25 + $0x58] sm:$0xff] %v1631_v8  ;;  %v1628_v57 = vadd.f32 %v1612_v4, %v1596_v0  ;;  %v1597_v14 = vmax.f32 %v1581_v11, 0.0 }
 0x342   : > { %2096 = vrsqrt.f32 %v1509_v34 }
 0x343   : > { %1644 = vst [vmem:[%s2574_s25 + $0x40] sm:$0xff] %v1628_v57  ;;  %v1629_v15 = vadd.f32 %v1613_v13, %v1597_v14 }
 0x345   : > { %1645 = vst [vmem:[%s2574_s25 + $0x48] sm:$0xff] %v1629_v15 }
 0x346   : > { %v2091_v16 = vpop.eup %2090 }
 0x347   : > { %v1538_v19 = vmul.f32 %v2091_v16, %v2524_v38 }
 0x348   : > { %v2093_v20 = vpop.eup %2092 }
 0x349   : > { %v1561_v3 = vmul.f32 %v2551_v61, %v1538_v19  ;;  %v1539_v23 = vmul.f32 %v2093_v20, %v2531_v46 }
 0x34a   : > { %v2095_v25 = vpop.eup %2094 }
 0x34b   : > { %v1584_v5 = vadd.f32 %v2557_v7, %v1561_v3  ;;  %v1562_v9 = vmul.f32 %v2551_v61, %v1539_v23  ;;  %v1540_v28 = vmul.f32 %v2095_v25, %v2538_v48 }
 0x34c   : > { %v2097_v29 = vpop.eup %2096 }
 0x34d   : > { %v1600_v60 = vmax.f32 %v1584_v5, 0.0  ;;  %v1585_v38 = vadd.f32 %v2557_v7, %v1562_v9  ;;  %v1563_v40 = vmul.f32 %v2551_v61, %v1540_v28  ;;  %v1541_v46 = vmul.f32 %v2097_v29, %v2544_v21 }
 0x34f   : > { %v1632_v12 = vadd.f32 %v1616_v30, %v1600_v60  ;;  %v1601_v32 = vmax.f32 %v1585_v38, 0.0  ;;  %v1586_v33 = vadd.f32 %v2557_v7, %v1563_v40  ;;  %v1564_v48 = vmul.f32 %v2551_v61, %v1541_v46 }
 0x351   : > { %1648 = vst [vmem:[%s2574_s25 + $0x60] sm:$0xff] %v1632_v12  ;;  %v1633_v36 = vadd.f32 %v1617_v31, %v1601_v32  ;;  %v1602_v37 = vmax.f32 %v1586_v33, 0.0  ;;  %v1587_v39 = vadd.f32 %v2557_v7, %v1564_v48 }
 0x353   : > { %1649 = vst [vmem:[%s2574_s25 + $0x68] sm:$0xff] %v1633_v36  ;;  %v1634_v43 = vadd.f32 %v1618_v35, %v1602_v37  ;;  %v1603_v44 = vmax.f32 %v1587_v39, 0.0 }
 0x355   : > { %1650 = vst [vmem:[%s2574_s25 + $0x70] sm:$0xff] %v1634_v43  ;;  %v1635_v21 = vadd.f32 %v1619_v41, %v1603_v44 }
 0x357   : > { %1651 = vst [vmem:[%s2574_s25 + $0x78] sm:$0xff] %v1635_v21 }
 0x358 PF: > { %s20_s15 = sadd.s32 1, %s2120_s15   ;;  %s2670_s13 = smov %s2116_s14 }
 0x359   : > { %p17_p6 = scmp.ge.s32.totalorder %s20_s15, 4   ;;  %s2671_s14 = smov %s2673_s16 }
 0x35b   :  { %19 = sbr.rel (!%p17_p6) target bundleno = 2 (0x2), region = 108 }

</bundles_post_ra>
